<compile_context>
chip_gen: v7x
topology: tpu7x:2x2x1
jax: 0.10.0
libtpu: 0.0.40
codegen_flags: <defaults>
</compile_context>

<pallas_src>
import functools
import numpy as np
import jax
import jax.numpy as jnp
from jax import lax
from jax.experimental import pallas as pl
from jax.experimental.pallas import tpu as pltpu

LANES = 128   # output lane axis: one lane per interior point (P <= 128 here)
VPAD = 8      # velocity components padded to 8 rows/cols (sublane-friendly)
CHUNK = 256   # MC samples processed per inner-loop step (kills the h spill)


def velocity_kernel(vpad_ref,    # VMEM (C, CHUNK, 8)  bf16  MC samples, cols 0..2 = v, rest 0
                    vt_ref,      # VMEM (C, 8, CHUNK)  bf16  transposed samples (rows 0..2 used)
                    w1big_ref,   # VMEM (8, P*H)       bf16  first-layer velocity weights, tiled per point
                    prow_ref,    # VMEM (1, P*H)       f32   per-point (position,time,bias) pre-activation
                    w2big_ref,   # VMEM (P*H, 128)     f32   block-diag 2nd layer, volume/(N*rho) folded in
                    bias_ref,    # VMEM (8, 128)       f32   b2 * sum_n(v) * scale, per lane
                    out_ref):    # VMEM (8, 128)       f32   rows 0..2 = velocity comps, lane i = point i
    n_chunks = vpad_ref.shape[0]
    ph = w1big_ref.shape[1]
    w1big = w1big_ref[...]          # bf16, resident across chunks
    prow = prow_ref[...]            # f32

    def body(c, g):
        v_c = vpad_ref[c]                                                    # (CHUNK, 8)  bf16
        # First MLP layer for every (point, hidden) column: bf16 MXU, f32 accumulate.
        pre = jnp.dot(v_c, w1big, preferred_element_type=jnp.float32) + prow  # (CHUNK, PH) f32
        # bf16 tanh (packed EUP on v6e/v7x); h stays bf16 for the reduction matmul.
        h = jnp.tanh(pre.astype(jnp.bfloat16))                               # (CHUNK, PH) bf16
        # Monte-Carlo partial reduction over this chunk (K = CHUNK) on the MXU.
        return g + jnp.dot(vt_ref[c], h, preferred_element_type=jnp.float32)  # (8, PH) f32

    g = lax.fori_loop(0, n_chunks, body,
                      jnp.zeros((VPAD, ph), jnp.float32), unroll=True)
    # Second MLP layer: block-diagonal W2 (scale folded in) routes each point's H-block
    # to its own output lane; add the pre-scaled b2 * sum_n(v) term.
    out_ref[...] = (jnp.dot(g, w2big_ref[...], preferred_element_type=jnp.float32)
                    + bias_ref[...])


def prepare_velocity_weights(w1, b1, w2, b2, nr_points):
    """Weight-only layout plumbing, done ONCE per trained f_alpha (hoisted out of the call path)."""
    f32 = jnp.float32
    w1 = jnp.asarray(w1, f32)
    b1 = jnp.asarray(b1, f32)
    w2 = jnp.asarray(w2, f32)
    b2 = jnp.asarray(b2, f32)
    P = int(nr_points)
    H = w1.shape[1]
    PH = P * H
    assert P <= LANES, "each interior point maps to one output lane"
    # Velocity rows of W1, tiled once per point, bf16 for the MXU.
    w1big = (jnp.zeros((VPAD, PH), f32).at[:3, :]
             .set(jnp.tile(w1[:3, :], (1, P)))).astype(jnp.bfloat16)
    # Unscaled block-diagonal second layer: routes point p's H-block to lane p.
    idx = jnp.arange(PH)
    w2blk = jnp.zeros((PH, LANES), f32).at[idx, idx // H].set(jnp.tile(w2[:, 0], (P,)))
    return dict(w1big=w1big, w2blk=w2blk, w1_rt=w1[3:7, :], b1=b1, b2=b2,
                P=P, H=H, PH=PH)


def velocity_pallas(prep, points, rho, t, v_samples, volume):
    """points (P,3), rho (P,1), v_samples (N,3); prep from prepare_velocity_weights."""
    f32 = jnp.float32
    points = points.astype(f32)
    rho = rho.astype(f32)
    v_samples = v_samples.astype(f32)
    P, H, PH = prep["P"], prep["H"], prep["PH"]
    N = v_samples.shape[0]
    chunk = min(CHUNK, N)
    assert N % chunk == 0 and chunk % 8 == 0
    n_chunks = N // chunk

    # ---- per-call layout plumbing (points / rho / MC samples change every forward) ----
    v3 = v_samples.reshape(n_chunks, chunk, 3)
    vpad3 = (jnp.zeros((n_chunks, chunk, VPAD), f32).at[:, :, :3].set(v3)
             ).astype(jnp.bfloat16)
    vt3 = (jnp.zeros((n_chunks, VPAD, chunk), f32).at[:, :3, :]
           .set(jnp.swapaxes(v3, 1, 2))).astype(jnp.bfloat16)
    # point-dependent part of the first-layer pre-activation (hoisted out of the kernel)
    prow = (points @ prep["w1_rt"][:3, :] + t * prep["w1_rt"][3:4, :]
            + prep["b1"][None, :]).reshape(1, PH)
    # fold volume/(N*rho_p) into the W2 columns and the b2*sum(v) bias (lanes >= P are 0)
    scale = jnp.zeros((LANES,), f32).at[:P].set(volume / (N * rho[:, 0]))
    w2big = prep["w2blk"] * scale[None, :]
    sum_v = jnp.sum(v_samples, axis=0)                                       # (3,)
    bias = jnp.zeros((VPAD, LANES), f32).at[:3, :].set(
        prep["b2"][0] * sum_v[:, None] * scale[None, :])

    out_padded = pl.pallas_call(
        velocity_kernel,
        out_shape=jax.ShapeDtypeStruct((VPAD, LANES), f32),
        grid=(1,),
        in_specs=[
            pl.BlockSpec((n_chunks, chunk, VPAD), lambda i: (0, 0, 0)),  # v samples (chunked)
            pl.BlockSpec((n_chunks, VPAD, chunk), lambda i: (0, 0, 0)),  # v^T (chunked)
            pl.BlockSpec((VPAD, PH), lambda i: (0, 0)),                  # tiled W1 (velocity rows)
            pl.BlockSpec((1, PH), lambda i: (0, 0)),                     # flattened point rows
            pl.BlockSpec((PH, LANES), lambda i: (0, 0)),                 # block-diag W2 (scaled)
            pl.BlockSpec((VPAD, LANES), lambda i: (0, 0)),               # b2*sum(v)*scale
        ],
        out_specs=pl.BlockSpec((VPAD, LANES), lambda i: (0, 0)),
        compiler_params=pltpu.CompilerParams(dimension_semantics=("arbitrary",)),
    )(vpad3, vt3, prep["w1big"], prow, w2big, bias)

    # rows 0..2 = (Vx, Vy, Vz), lane i = point i  ->  (P, 3)
    return out_padded[:3, :P].T


def velocity_ref(points, rho, t, v_samples, w1, b1, w2, b2, volume):
    """Pure-JAX f32 reference mirroring the PyTorch forward."""
    N = v_samples.shape[0]
    outs = []
    for i in range(points.shape[0]):
        r = jnp.broadcast_to(points[i], (N, 3))
        tt = jnp.full((N, 1), t, jnp.float32)
        # feature order: [vx, vy, vz, rx, ry, rz, t]
        X = jnp.concatenate([v_samples, r, tt], axis=-1)                 # (N, 7)
        f = jnp.tanh(X @ w1 + b1) @ w2 + b2                              # (N, 1) == f_alpha
        integrand = jnp.concatenate(
            [f * v_samples[:, 0:1], f * v_samples[:, 1:2], f * v_samples[:, 2:3]], axis=-1)
        outs.append(volume * jnp.mean(integrand, axis=0))                # MC integral, (3,)
    return jnp.stack(outs) / rho                                         # (P, 3)


if __name__ == "__main__":
    P, N, H = 8, 1024, 32          # nr_points, montecarlo_points, hidden size of f_alpha
    t = 0.25
    volume = 8.0                   # velocity domain [-1, 1]^3

    key = jax.random.PRNGKey(0)
    ks = jax.random.split(key, 7)
    points = jax.random.uniform(ks[0], (P, 3), jnp.float32)              # geometry.sample_interior
    rho = jax.random.uniform(ks[1], (P, 1), jnp.float32, minval=0.5, maxval=1.5)
    v_samples = jax.random.uniform(ks[2], (N, 3), jnp.float32, minval=-1.0, maxval=1.0)
    w1 = 0.5 * jax.random.normal(ks[3], (7, H), jnp.float32)
    b1 = 0.1 * jax.random.normal(ks[4], (H,), jnp.float32)
    w2 = 0.5 * jax.random.normal(ks[5], (H, 1), jnp.float32)
    b2 = 0.1 * jax.random.normal(ks[6], (1,), jnp.float32)

    prep = prepare_velocity_weights(w1, b1, w2, b2, P)                   # once per trained f_alpha
    vel_fn = jax.jit(functools.partial(velocity_pallas, prep))

    out = vel_fn(points, rho, t, v_samples, volume)
    out = jax.block_until_ready(out)

    ref = velocity_ref(points, rho, t, v_samples, w1, b1, w2, b2, volume)
    # bf16 MXU operands + bf16 tanh vs. an f32 reference -> slightly relaxed tolerance.
    np.testing.assert_allclose(np.asarray(out), np.asarray(ref), rtol=2e-2, atol=3e-2)

    print("KERNEL_OK")
</pallas_src>

<mosaic_0001>
module attributes {stable_mosaic.version = 11 : i64} {
  func.func @velocity_kernel(%arg0: i32, %arg1: memref<4x256x8xbf16, #tpu.memory_space<vmem>>, %arg2: memref<4x8x256xbf16, #tpu.memory_space<vmem>>, %arg3: memref<8x256xbf16, #tpu.memory_space<vmem>>, %arg4: memref<1x256xf32, #tpu.memory_space<vmem>>, %arg5: memref<256x128xf32, #tpu.memory_space<vmem>>, %arg6: memref<8x128xf32, #tpu.memory_space<vmem>>, %arg7: memref<8x128xf32, #tpu.memory_space<vmem>>) attributes {dimension_semantics = [#tpu.dimension_semantics<arbitrary>], iteration_bounds = array<i64: 1>, scalar_prefetch = 0 : i64, scratch_operands = 0 : i64, tpu.core_type = #tpu.core_type<tc>, window_params = [{pipeline_mode = #tpu.pipeline_mode<synchronous>, transform_indices = @transform_0, window_bounds = array<i64: 4, 256, 8>}, {pipeline_mode = #tpu.pipeline_mode<synchronous>, transform_indices = @transform_1, window_bounds = array<i64: 4, 8, 256>}, {pipeline_mode = #tpu.pipeline_mode<synchronous>, transform_indices = @transform_2, window_bounds = array<i64: 8, 256>}, {pipeline_mode = #tpu.pipeline_mode<synchronous>, transform_indices = @transform_3, window_bounds = array<i64: 1, 256>}, {pipeline_mode = #tpu.pipeline_mode<synchronous>, transform_indices = @transform_4, window_bounds = array<i64: 256, 128>}, {pipeline_mode = #tpu.pipeline_mode<synchronous>, transform_indices = @transform_5, window_bounds = array<i64: 8, 128>}, {pipeline_mode = #tpu.pipeline_mode<synchronous>, transform_indices = @transform_6, window_bounds = array<i64: 8, 128>}]} {
    %c0 = arith.constant 0 : index
    %c0_0 = arith.constant 0 : index
    %0 = vector.load %arg3[%c0, %c0_0] : memref<8x256xbf16, #tpu.memory_space<vmem>>, vector<8x256xbf16>
    %c0_1 = arith.constant 0 : index
    %c0_2 = arith.constant 0 : index
    %1 = vector.load %arg4[%c0_1, %c0_2] : memref<1x256xf32, #tpu.memory_space<vmem>>, vector<1x256xf32>
    %cst = arith.constant 0.000000e+00 : f32
    %2 = vector.broadcast %cst : f32 to vector<8x256xf32>
    %c0_i32 = arith.constant 0 : i32
    %3 = arith.index_cast %c0_i32 : i32 to index
    %c0_3 = arith.constant 0 : index
    %c0_4 = arith.constant 0 : index
    %4 = vector.load %arg1[%3, %c0_3, %c0_4] : memref<4x256x8xbf16, #tpu.memory_space<vmem>>, vector<1x256x8xbf16>
    %5 = vector.shape_cast %4 : vector<1x256x8xbf16> to vector<256x8xbf16>
    %cst_5 = arith.constant dense<0.000000e+00> : vector<256x256xf32>
    %6 = tpu.matmul %5, %0, %cst_5 {dimension_numbers = #tpu.dot_dimension_numbers<[1], [0], [0], [1], [0, 0, 1, 1], [], []>} : vector<256x8xbf16>, vector<8x256xbf16>, vector<256x256xf32> -> vector<256x256xf32>
    %7 = vector.broadcast %1 : vector<1x256xf32> to vector<256x256xf32>
    %8 = arith.addf %6, %7 : vector<256x256xf32>
    %9 = arith.truncf %8 : vector<256x256xf32> to vector<256x256xbf16>
    %10 = math.tanh %9 : vector<256x256xbf16>
    %11 = arith.index_cast %c0_i32 : i32 to index
    %c0_6 = arith.constant 0 : index
    %c0_7 = arith.constant 0 : index
    %12 = vector.load %arg2[%11, %c0_6, %c0_7] : memref<4x8x256xbf16, #tpu.memory_space<vmem>>, vector<1x8x256xbf16>
    %13 = vector.shape_cast %12 : vector<1x8x256xbf16> to vector<8x256xbf16>
    %cst_8 = arith.constant dense<0.000000e+00> : vector<8x256xf32>
    %14 = tpu.matmul %13, %10, %cst_8 {dimension_numbers = #tpu.dot_dimension_numbers<[1], [0], [0], [1], [0, 0, 1, 1], [], []>} : vector<8x256xbf16>, vector<256x256xbf16>, vector<8x256xf32> -> vector<8x256xf32>
    %15 = arith.addf %2, %14 : vector<8x256xf32>
    %c1_i32 = arith.constant 1 : i32
    %16 = arith.index_cast %c1_i32 : i32 to index
    %c0_9 = arith.constant 0 : index
    %c0_10 = arith.constant 0 : index
    %17 = vector.load %arg1[%16, %c0_9, %c0_10] : memref<4x256x8xbf16, #tpu.memory_space<vmem>>, vector<1x256x8xbf16>
    %18 = vector.shape_cast %17 : vector<1x256x8xbf16> to vector<256x8xbf16>
    %cst_11 = arith.constant dense<0.000000e+00> : vector<256x256xf32>
    %19 = tpu.matmul %18, %0, %cst_11 {dimension_numbers = #tpu.dot_dimension_numbers<[1], [0], [0], [1], [0, 0, 1, 1], [], []>} : vector<256x8xbf16>, vector<8x256xbf16>, vector<256x256xf32> -> vector<256x256xf32>
    %20 = vector.broadcast %1 : vector<1x256xf32> to vector<256x256xf32>
    %21 = arith.addf %19, %20 : vector<256x256xf32>
    %22 = arith.truncf %21 : vector<256x256xf32> to vector<256x256xbf16>
    %23 = math.tanh %22 : vector<256x256xbf16>
    %24 = arith.index_cast %c1_i32 : i32 to index
    %c0_12 = arith.constant 0 : index
    %c0_13 = arith.constant 0 : index
    %25 = vector.load %arg2[%24, %c0_12, %c0_13] : memref<4x8x256xbf16, #tpu.memory_space<vmem>>, vector<1x8x256xbf16>
    %26 = vector.shape_cast %25 : vector<1x8x256xbf16> to vector<8x256xbf16>
    %cst_14 = arith.constant dense<0.000000e+00> : vector<8x256xf32>
    %27 = tpu.matmul %26, %23, %cst_14 {dimension_numbers = #tpu.dot_dimension_numbers<[1], [0], [0], [1], [0, 0, 1, 1], [], []>} : vector<8x256xbf16>, vector<256x256xbf16>, vector<8x256xf32> -> vector<8x256xf32>
    %28 = arith.addf %15, %27 : vector<8x256xf32>
    %c2_i32 = arith.constant 2 : i32
    %29 = arith.index_cast %c2_i32 : i32 to index
    %c0_15 = arith.constant 0 : index
    %c0_16 = arith.constant 0 : index
    %30 = vector.load %arg1[%29, %c0_15, %c0_16] : memref<4x256x8xbf16, #tpu.memory_space<vmem>>, vector<1x256x8xbf16>
    %31 = vector.shape_cast %30 : vector<1x256x8xbf16> to vector<256x8xbf16>
    %cst_17 = arith.constant dense<0.000000e+00> : vector<256x256xf32>
    %32 = tpu.matmul %31, %0, %cst_17 {dimension_numbers = #tpu.dot_dimension_numbers<[1], [0], [0], [1], [0, 0, 1, 1], [], []>} : vector<256x8xbf16>, vector<8x256xbf16>, vector<256x256xf32> -> vector<256x256xf32>
    %33 = vector.broadcast %1 : vector<1x256xf32> to vector<256x256xf32>
    %34 = arith.addf %32, %33 : vector<256x256xf32>
    %35 = arith.truncf %34 : vector<256x256xf32> to vector<256x256xbf16>
    %36 = math.tanh %35 : vector<256x256xbf16>
    %37 = arith.index_cast %c2_i32 : i32 to index
    %c0_18 = arith.constant 0 : index
    %c0_19 = arith.constant 0 : index
    %38 = vector.load %arg2[%37, %c0_18, %c0_19] : memref<4x8x256xbf16, #tpu.memory_space<vmem>>, vector<1x8x256xbf16>
    %39 = vector.shape_cast %38 : vector<1x8x256xbf16> to vector<8x256xbf16>
    %cst_20 = arith.constant dense<0.000000e+00> : vector<8x256xf32>
    %40 = tpu.matmul %39, %36, %cst_20 {dimension_numbers = #tpu.dot_dimension_numbers<[1], [0], [0], [1], [0, 0, 1, 1], [], []>} : vector<8x256xbf16>, vector<256x256xbf16>, vector<8x256xf32> -> vector<8x256xf32>
    %41 = arith.addf %28, %40 : vector<8x256xf32>
    %c3_i32 = arith.constant 3 : i32
    %42 = arith.index_cast %c3_i32 : i32 to index
    %c0_21 = arith.constant 0 : index
    %c0_22 = arith.constant 0 : index
    %43 = vector.load %arg1[%42, %c0_21, %c0_22] : memref<4x256x8xbf16, #tpu.memory_space<vmem>>, vector<1x256x8xbf16>
    %44 = vector.shape_cast %43 : vector<1x256x8xbf16> to vector<256x8xbf16>
    %cst_23 = arith.constant dense<0.000000e+00> : vector<256x256xf32>
    %45 = tpu.matmul %44, %0, %cst_23 {dimension_numbers = #tpu.dot_dimension_numbers<[1], [0], [0], [1], [0, 0, 1, 1], [], []>} : vector<256x8xbf16>, vector<8x256xbf16>, vector<256x256xf32> -> vector<256x256xf32>
    %46 = vector.broadcast %1 : vector<1x256xf32> to vector<256x256xf32>
    %47 = arith.addf %45, %46 : vector<256x256xf32>
    %48 = arith.truncf %47 : vector<256x256xf32> to vector<256x256xbf16>
    %49 = math.tanh %48 : vector<256x256xbf16>
    %50 = arith.index_cast %c3_i32 : i32 to index
    %c0_24 = arith.constant 0 : index
    %c0_25 = arith.constant 0 : index
    %51 = vector.load %arg2[%50, %c0_24, %c0_25] : memref<4x8x256xbf16, #tpu.memory_space<vmem>>, vector<1x8x256xbf16>
    %52 = vector.shape_cast %51 : vector<1x8x256xbf16> to vector<8x256xbf16>
    %cst_26 = arith.constant dense<0.000000e+00> : vector<8x256xf32>
    %53 = tpu.matmul %52, %49, %cst_26 {dimension_numbers = #tpu.dot_dimension_numbers<[1], [0], [0], [1], [0, 0, 1, 1], [], []>} : vector<8x256xbf16>, vector<256x256xbf16>, vector<8x256xf32> -> vector<8x256xf32>
    %54 = arith.addf %41, %53 : vector<8x256xf32>
    %c4_i32 = arith.constant 4 : i32
    %c0_27 = arith.constant 0 : index
    %c0_28 = arith.constant 0 : index
    %55 = vector.load %arg5[%c0_27, %c0_28] : memref<256x128xf32, #tpu.memory_space<vmem>>, vector<256x128xf32>
    %cst_29 = arith.constant dense<0.000000e+00> : vector<8x128xf32>
    %56 = tpu.matmul %54, %55, %cst_29 {dimension_numbers = #tpu.dot_dimension_numbers<[1], [0], [0], [1], [0, 0, 1, 1], [], []>} : vector<8x256xf32>, vector<256x128xf32>, vector<8x128xf32> -> vector<8x128xf32>
    %c0_30 = arith.constant 0 : index
    %c0_31 = arith.constant 0 : index
    %57 = vector.load %arg6[%c0_30, %c0_31] : memref<8x128xf32, #tpu.memory_space<vmem>>, vector<8x128xf32>
    %58 = arith.addf %56, %57 : vector<8x128xf32>
    %c0_32 = arith.constant 0 : index
    %c0_33 = arith.constant 0 : index
    %59 = vector.load %arg7[%c0_32, %c0_33] : memref<8x128xf32, #tpu.memory_space<vmem>>, vector<8x128xf32>
    tpu.vector_store %arg7[%c0_32, %c0_33], %58 {strides = array<i32>} : memref<8x128xf32, #tpu.memory_space<vmem>>, vector<8x128xf32>,
    return
  }
  func.func @transform_0(%arg0: i32) -> (i32, i32, i32) {
    %c0_i32 = arith.constant 0 : i32
    %c0_i32_0 = arith.constant 0 : i32
    %c0_i32_1 = arith.constant 0 : i32
    %c0_i32_2 = arith.constant 0 : i32
    return %c0_i32, %c0_i32_0, %c0_i32_1 : i32, i32, i32
  }
  func.func @transform_1(%arg0: i32) -> (i32, i32, i32) {
    %c0_i32 = arith.constant 0 : i32
    %c0_i32_0 = arith.constant 0 : i32
    %c0_i32_1 = arith.constant 0 : i32
    %c0_i32_2 = arith.constant 0 : i32
    return %c0_i32, %c0_i32_0, %c0_i32_1 : i32, i32, i32
  }
  func.func @transform_2(%arg0: i32) -> (i32, i32) {
    %c0_i32 = arith.constant 0 : i32
    %c0_i32_0 = arith.constant 0 : i32
    %c0_i32_1 = arith.constant 0 : i32
    return %c0_i32, %c0_i32_0 : i32, i32
  }
  func.func @transform_3(%arg0: i32) -> (i32, i32) {
    %c0_i32 = arith.constant 0 : i32
    %c0_i32_0 = arith.constant 0 : i32
    %c0_i32_1 = arith.constant 0 : i32
    return %c0_i32, %c0_i32_0 : i32, i32
  }
  func.func @transform_4(%arg0: i32) -> (i32, i32) {
    %c0_i32 = arith.constant 0 : i32
    %c0_i32_0 = arith.constant 0 : i32
    %c0_i32_1 = arith.constant 0 : i32
    return %c0_i32, %c0_i32_0 : i32, i32
  }
  func.func @transform_5(%arg0: i32) -> (i32, i32) {
    %c0_i32 = arith.constant 0 : i32
    %c0_i32_0 = arith.constant 0 : i32
    %c0_i32_1 = arith.constant 0 : i32
    return %c0_i32, %c0_i32_0 : i32, i32
  }
  func.func @transform_6(%arg0: i32) -> (i32, i32) {
    %c0_i32 = arith.constant 0 : i32
    %c0_i32_0 = arith.constant 0 : i32
    %c0_i32_1 = arith.constant 0 : i32
    return %c0_i32, %c0_i32_0 : i32, i32
  }
}

</mosaic_0001>

<bundles_post_ra>
// kernel: velocity_pallas.1
= control target key start
LH: loop header
LB: loop body
LE: loop exit
PB: predicated region body
PF: predicated region fallthrough
CT: control target
= control target key end

     0   :  { %vm203_vm0 = vcmask 1043456   ;;  %v3938_v1 = vmov 0   ;;  %vm154_vm1 = vcmask 64512   ;;  %v59_v47 = vlaneseq  ;;  %s3931_s2 = inlined_call_operand.vmem [shape: bf16[8,256], index: 2, kind: input, shape index: {}]   ;;  %s3932_s0 = inlined_call_operand.vmem [shape: bf16[4,256,8], index: 0, kind: input, shape index: {}]   ;;  %s3933_s3 = inlined_call_operand.vmem [shape: f32[1,256], index: 3, kind: input, shape index: {}]   ;;  %s3934_s1 = inlined_call_operand.vmem [shape: bf16[4,8,256], index: 1, kind: input, shape index: {}]   ;;  %s3935_s4 = inlined_call_operand.vmem [shape: f32[256,128], index: 4, kind: input, shape index: {}]   ;;  %s3936_s5 = inlined_call_operand.vmem [shape: f32[8,128], index: 5, kind: input, shape index: {}]   ;;  %s3937_s6 = inlined_call_operand.vmem [shape: f32[8,128], index: 6, kind: output, shape index: {}]  }
   0x1   :  { %v24_v0 = vld [vmem:[%s3931_s2] sm:$0xff]  ;;  %661 = vmatprep.mubr.bf16.mxu1 %v3938_v1  ;;  %242 = vmatprep.mubr.bf16.mxu0 %v3938_v1  ;;  %v2356_v7 = vld [vmem:[%s3932_s0 + $0x88] sm:$0xff]   ;;  %v2357_v9 = vld [vmem:[%s3932_s0 + $0x90] sm:$0xff]  }
   0x2   :  { %v2049_v2 = vcombine.high %v24_v0, %v24_v0  ;;  %v2048_v3 = vcombine.low %v24_v0, %v24_v0  ;;  %v2355_v5 = vld [vmem:[%s3932_s0 + $0x80] sm:$0xff]   ;;  %v2365_v8 = vld [vmem:[%s3932_s0 + $0x8] sm:$0xff]   ;;  %v2367_v10 = vld [vmem:[%s3932_s0 + $0x10] sm:$0xff]   ;;  %v60_v48 = vshrl.u32 %v59_v47, 7 }
   0x3   :  { %v2363_v6 = vld [vmem:[%s3932_s0] sm:$0xff]   ;;  %v2358_v11 = vld [vmem:[%s3932_s0 + $0x98] sm:$0xff]   ;;  %v2360_v15 = vld [vmem:[%s3932_s0 + $0xa8] sm:$0xff]  }
   0x4   :  { %2115 = vmatprep.subr.msk.bf16.mxu1 %vm203_vm0, %v2049_v2  ;;  %v2726_v4 = vsel %vm203_vm0, %v2048_v3, 0  ;;  %2050 = vmatprep.subr.msk.bf16.mxu0 %vm203_vm0, %v2049_v2  ;;  %v2369_v12 = vld [vmem:[%s3932_s0 + $0x18] sm:$0xff]   ;;  %v2359_v13 = vld [vmem:[%s3932_s0 + $0xa0] sm:$0xff]   ;;  %v2373_v16 = vld [vmem:[%s3932_s0 + $0x28] sm:$0xff]   ;;  %v61_v50 = vsub.s32 0, %v60_v48  ;;  %v65_v52 = vsub.s32 1, %v60_v48 }
   0x5   :  { %630 = vmatpush1.bf16.msra.mxu1 %v2726_v4  ;;  %211 = vmatpush1.bf16.msra.mxu0 %v2726_v4  ;;  %v2371_v14 = vld [vmem:[%s3932_s0 + $0x20] sm:$0xff]   ;;  %v2361_v17 = vld [vmem:[%s3932_s0 + $0xb0] sm:$0xff]   ;;  %v2362_v19 = vld [vmem:[%s3932_s0 + $0xb8] sm:$0xff]  }
   0x6   :  { %2185 = vmatprep.subr.msk.bf16.mxu1 %vm203_vm0, %v2049_v2  ;;  %v2375_v18 = vld [vmem:[%s3932_s0 + $0x30] sm:$0xff]   ;;  %v2377_v20 = vld [vmem:[%s3932_s0 + $0x38] sm:$0xff]   ;;  %v2364_v21 = vld [vmem:[%s3932_s0 + $0xc0] sm:$0xff]  }
   0x7   :  { %v2379_v22 = vld [vmem:[%s3932_s0 + $0x40] sm:$0xff]   ;;  %v2366_v23 = vld [vmem:[%s3932_s0 + $0xc8] sm:$0xff]   ;;  %v2368_v25 = vld [vmem:[%s3932_s0 + $0xd0] sm:$0xff]  }
   0x8   :  { %2116 = vmatmul.mubr.msk.bf16.vlgmr.msra.gmra.mrb[0].mxu1 %vm154_vm1, %v2355_v5  ;;  %2051 = vmatmul.mubr.msk.bf16.vlgmr.msra.gmra.mrb[0].mxu0 %vm154_vm1, %v2363_v6  ;;  %v2381_v24 = vld [vmem:[%s3932_s0 + $0x48] sm:$0xff]   ;;  %v2383_v26 = vld [vmem:[%s3932_s0 + $0x50] sm:$0xff]   ;;  %v2370_v27 = vld [vmem:[%s3932_s0 + $0xd8] sm:$0xff]  }
   0x9   :  { %1146 = vmatpush1.bf16.msra.mxu1 %v2726_v4  ;;  %671 = vmatprep.mubr.bf16.mxu1 %v3938_v1  ;;  %v2385_v28 = vld [vmem:[%s3932_s0 + $0x58] sm:$0xff]   ;;  %v2372_v29 = vld [vmem:[%s3932_s0 + $0xe0] sm:$0xff]   ;;  %v2374_v31 = vld [vmem:[%s3932_s0 + $0xe8] sm:$0xff]  }
   0xa   :  { %2253 = vmatprep.subr.msk.bf16.mxu1 %vm203_vm0, %v2049_v2  ;;  %252 = vmatprep.mubr.bf16.mxu0 %v3938_v1  ;;  %v2387_v30 = vld [vmem:[%s3932_s0 + $0x60] sm:$0xff]   ;;  %v2389_v32 = vld [vmem:[%s3932_s0 + $0x68] sm:$0xff]   ;;  %v2376_v33 = vld [vmem:[%s3932_s0 + $0xf0] sm:$0xff]  }
   0xb   :  { %v2391_v34 = vld [vmem:[%s3932_s0 + $0x70] sm:$0xff]   ;;  %v2378_v35 = vld [vmem:[%s3932_s0 + $0xf8] sm:$0xff]   ;;  %v2380_v37 = vld [vmem:[%s3932_s0 + $0x100] sm:$0xff]  }
   0xc   :  { %v2393_v36 = vld [vmem:[%s3932_s0 + $0x78] sm:$0xff]   ;;  %v2382_v38 = vld [vmem:[%s3932_s0 + $0x108] sm:$0xff]   ;;  %v2384_v39 = vld [vmem:[%s3932_s0 + $0x110] sm:$0xff]  }
   0xd   :  { %v2386_v40 = vld [vmem:[%s3932_s0 + $0x118] sm:$0xff]   ;;  %v2388_v41 = vld [vmem:[%s3932_s0 + $0x120] sm:$0xff]   ;;  %v2390_v42 = vld [vmem:[%s3932_s0 + $0x128] sm:$0xff]  }
   0xe   :  { %v2392_v43 = vld [vmem:[%s3932_s0 + $0x130] sm:$0xff]   ;;  %v2394_v44 = vld [vmem:[%s3932_s0 + $0x138] sm:$0xff]   ;;  %v2395_v45 = vld [vmem:[%s3932_s0 + $0x140] sm:$0xff]  }
   0xf   :  { %v2396_v46 = vld [vmem:[%s3932_s0 + $0x148] sm:$0xff]   ;;  %v2397_v49 = vld [vmem:[%s3932_s0 + $0x150] sm:$0xff]   ;;  %v25_v51 = vld [vmem:[%s3933_s3] sm:$0x3] }
  0x10   :  { %2117 = vmatmul.mubr.msk.bf16.gmra.mrb[4].mxu1 %vm154_vm1, %v2356_v7  ;;  %2052 = vmatmul.mubr.msk.bf16.gmra.mrb[4].mxu0 %vm154_vm1, %v2365_v8  ;;  %v2952_v53 = vrot.slane %v25_v51, %v61_v50  ;;  %v2954_v55 = vrot.slane %v25_v51, %v65_v52  ;;  %v2398_v57 = vld [vmem:[%s3932_s0 + $0x158] sm:$0xff]  }
  0x11   :  { %681 = vmatprep.mubr.bf16.mxu1 %v3938_v1  ;;  %262 = vmatprep.mubr.bf16.mxu0 %v3938_v1 }
  0x18   :  { %2118 = vmatmul.mubr.msk.bf16.gmra.mrb[8].mxu1 %vm154_vm1, %v2357_v9  ;;  %2053 = vmatmul.mubr.msk.bf16.gmra.mrb[8].mxu0 %vm154_vm1, %v2367_v10 }
  0x19   :  { %691 = vmatprep.mubr.bf16.mxu1 %v3938_v1  ;;  %272 = vmatprep.mubr.bf16.mxu0 %v3938_v1 }
  0x20   :  { %2119 = vmatmul.mubr.msk.bf16.gmra.mrb[12].mxu1 %vm154_vm1, %v2358_v11  ;;  %2054 = vmatmul.mubr.msk.bf16.gmra.mrb[12].mxu0 %vm154_vm1, %v2369_v12 }
  0x21   :  { %701 = vmatprep.mubr.bf16.mxu1 %v3938_v1  ;;  %282 = vmatprep.mubr.bf16.mxu0 %v3938_v1 }
  0x28   :  { %2120 = vmatmul.mubr.msk.bf16.gmra.mrb[16].mxu1 %vm154_vm1, %v2359_v13  ;;  %2055 = vmatmul.mubr.msk.bf16.gmra.mrb[16].mxu0 %vm154_vm1, %v2371_v14  ;;  %v2399_v13 = vld [vmem:[%s3932_s0 + $0x160] sm:$0xff]  }
  0x29   :  { %711 = vmatprep.mubr.bf16.mxu1 %v3938_v1  ;;  %292 = vmatprep.mubr.bf16.mxu0 %v3938_v1 }
  0x30   :  { %2121 = vmatmul.mubr.msk.bf16.gmra.mrb[20].mxu1 %vm154_vm1, %v2360_v15  ;;  %2056 = vmatmul.mubr.msk.bf16.gmra.mrb[20].mxu0 %vm154_vm1, %v2373_v16 }
  0x31   :  { %721 = vmatprep.mubr.bf16.mxu1 %v3938_v1  ;;  %302 = vmatprep.mubr.bf16.mxu0 %v3938_v1 }
  0x38   :  { %2122 = vmatmul.mubr.msk.bf16.gmra.mrb[24].mxu1 %vm154_vm1, %v2361_v17  ;;  %2057 = vmatmul.mubr.msk.bf16.gmra.mrb[24].mxu0 %vm154_vm1, %v2375_v18 }
  0x39   :  { %731 = vmatprep.mubr.bf16.mxu1 %v3938_v1  ;;  %312 = vmatprep.mubr.bf16.mxu0 %v3938_v1 }
  0x40   :  { %2123 = vmatmul.mubr.msk.bf16.gmra.mrb[28].mxu1 %vm154_vm1, %v2362_v19  ;;  %2058 = vmatmul.mubr.msk.bf16.gmra.mrb[28].mxu0 %vm154_vm1, %v2377_v20 }
  0x41   :  { %741 = vmatprep.mubr.bf16.mxu1 %v3938_v1  ;;  %322 = vmatprep.mubr.bf16.mxu0 %v3938_v1 }
  0x48   :  { %2124 = vmatmul.mubr.msk.bf16.gmra.mrb[32].mxu1 %vm154_vm1, %v2364_v21  ;;  %2059 = vmatmul.mubr.msk.bf16.gmra.mrb[32].mxu0 %vm154_vm1, %v2379_v22 }
  0x49   :  { %751 = vmatprep.mubr.bf16.mxu1 %v3938_v1  ;;  %332 = vmatprep.mubr.bf16.mxu0 %v3938_v1 }
  0x50   :  { %2125 = vmatmul.mubr.msk.bf16.gmra.mrb[36].mxu1 %vm154_vm1, %v2366_v23  ;;  %2060 = vmatmul.mubr.msk.bf16.gmra.mrb[36].mxu0 %vm154_vm1, %v2381_v24 }
  0x51   :  { %761 = vmatprep.mubr.bf16.mxu1 %v3938_v1  ;;  %342 = vmatprep.mubr.bf16.mxu0 %v3938_v1 }
  0x58   :  { %2126 = vmatmul.mubr.msk.bf16.gmra.mrb[40].mxu1 %vm154_vm1, %v2368_v25  ;;  %2061 = vmatmul.mubr.msk.bf16.gmra.mrb[40].mxu0 %vm154_vm1, %v2383_v26  ;;  %v2995_v26 = vld [vmem:[%s3934_s1 + $0x8] sm:$0xff] }
  0x59   :  { %771 = vmatprep.mubr.bf16.mxu1 %v3938_v1  ;;  %352 = vmatprep.mubr.bf16.mxu0 %v3938_v1 }
  0x60   :  { %2127 = vmatmul.mubr.msk.bf16.gmra.mrb[44].mxu1 %vm154_vm1, %v2370_v27  ;;  %2062 = vmatmul.mubr.msk.bf16.gmra.mrb[44].mxu0 %vm154_vm1, %v2385_v28 }
  0x61   :  { %781 = vmatprep.mubr.bf16.mxu1 %v3938_v1  ;;  %362 = vmatprep.mubr.bf16.mxu0 %v3938_v1 }
  0x68   :  { %2128 = vmatmul.mubr.msk.bf16.gmra.mrb[48].mxu1 %vm154_vm1, %v2372_v29  ;;  %2063 = vmatmul.mubr.msk.bf16.gmra.mrb[48].mxu0 %vm154_vm1, %v2387_v30  ;;  %v2134_v30 = vcombine.high %v2995_v26, %v2995_v26 }
  0x69   :  { %791 = vmatprep.mubr.bf16.mxu1 %v3938_v1  ;;  %372 = vmatprep.mubr.bf16.mxu0 %v3938_v1 }
  0x70   :  { %2129 = vmatmul.mubr.msk.bf16.gmra.mrb[52].mxu1 %vm154_vm1, %v2374_v31  ;;  %2064 = vmatmul.mubr.msk.bf16.gmra.mrb[52].mxu0 %vm154_vm1, %v2389_v32 }
  0x71   :  { %801 = vmatprep.mubr.bf16.mxu1 %v3938_v1  ;;  %382 = vmatprep.mubr.bf16.mxu0 %v3938_v1 }
  0x78   :  { %2130 = vmatmul.mubr.msk.bf16.gmra.mrb[56].mxu1 %vm154_vm1, %v2376_v33  ;;  %2065 = vmatmul.mubr.msk.bf16.gmra.mrb[56].mxu0 %vm154_vm1, %v2391_v34 }
  0x79   :  { %811 = vmatprep.mubr.bf16.mxu1 %v3938_v1  ;;  %392 = vmatprep.mubr.bf16.mxu0 %v3938_v1 }
  0x80   :  { %2131 = vmatmul.mubr.msk.bf16.gmra.mrb[60].mxu1 %vm154_vm1, %v2378_v35  ;;  %2066 = vmatmul.mubr.msk.bf16.gmra.mrb[60].mxu0 %vm154_vm1, %v2393_v36  ;;  %v2400_v36 = vld [vmem:[%s3932_s0 + $0x168] sm:$0xff]  }
  0x81   :  { %1177 = vmatprep.mubr.bf16.mxu1 %v3938_v1  ;;  %927 = vmatprep.mubr.bf16.mxu0 %v2134_v30  ;;  %v2402_v30 = vld [vmem:[%s3932_s0 + $0x178] sm:$0xff]  }
  0x88   :  { %2186 = vmatmul.mubr.msk.bf16.vlgmr.msra.gmra.mrb[64].mxu1 %vm154_vm1, %v2380_v37 }
  0x89   :  { %1616 = vmatpush1.bf16.msra.mxu1 %v2726_v4  ;;  %1187 = vmatprep.mubr.bf16.mxu1 %v3938_v1 }
  0x90   :  { %2187 = vmatmul.mubr.msk.bf16.gmra.mrb[68].mxu1 %vm154_vm1, %v2382_v38 }
  0x91   :  { %1197 = vmatprep.mubr.bf16.mxu1 %v3938_v1 }
  0x98   :  { %2188 = vmatmul.mubr.msk.bf16.gmra.mrb[72].mxu1 %vm154_vm1, %v2384_v39 }
  0x99   :  { %1207 = vmatprep.mubr.bf16.mxu1 %v3938_v1 }
  0xa0   :  { %2189 = vmatmul.mubr.msk.bf16.gmra.mrb[76].mxu1 %vm154_vm1, %v2386_v40 }
  0xa1   :  { %1217 = vmatprep.mubr.bf16.mxu1 %v3938_v1 }
  0xa8   :  { %2190 = vmatmul.mubr.msk.bf16.gmra.mrb[80].mxu1 %vm154_vm1, %v2388_v41 }
  0xa9   :  { %1227 = vmatprep.mubr.bf16.mxu1 %v3938_v1 }
  0xb0   :  { %2191 = vmatmul.mubr.msk.bf16.gmra.mrb[84].mxu1 %vm154_vm1, %v2390_v42 }
  0xb1   :  { %1237 = vmatprep.mubr.bf16.mxu1 %v3938_v1 }
  0xb8   :  { %2192 = vmatmul.mubr.msk.bf16.gmra.mrb[88].mxu1 %vm154_vm1, %v2392_v43 }
  0xb9   :  { %1247 = vmatprep.mubr.bf16.mxu1 %v3938_v1 }
  0xc0   :  { %2193 = vmatmul.mubr.msk.bf16.gmra.mrb[92].mxu1 %vm154_vm1, %v2394_v44 }
  0xc1   :  { %1257 = vmatprep.mubr.bf16.mxu1 %v3938_v1 }
  0xc8   :  { %2194 = vmatmul.mubr.msk.bf16.gmra.mrb[96].mxu1 %vm154_vm1, %v2395_v45 }
  0xc9   :  { %1267 = vmatprep.mubr.bf16.mxu1 %v3938_v1 }
  0xd0   :  { %2195 = vmatmul.mubr.msk.bf16.gmra.mrb[100].mxu1 %vm154_vm1, %v2396_v46 }
  0xd1   :  { %1277 = vmatprep.mubr.bf16.mxu1 %v3938_v1 }
  0xd8   :  { %2196 = vmatmul.mubr.msk.bf16.gmra.mrb[104].mxu1 %vm154_vm1, %v2397_v49 }
  0xd9   :  { %1287 = vmatprep.mubr.bf16.mxu1 %v3938_v1 }
  0xdb   :  { %v663_v54 = vpop.f32.mrb[0].mxu1  ;;  %v244_v0 = vpop.f32.mrb[0].mxu0 }
  0xdc   :  { %v665_v56 = vpop.f32.mrb[1].mxu1  ;;  %v664_v59 = vadd.f32 %v663_v54, %v2952_v53  ;;  %v2965_v3 = vadd.f32 %v244_v0, %v2952_v53  ;;  %v246_v4 = vpop.f32.mrb[1].mxu0 }
  0xdd   :  { %v667_v58 = vpop.f32.mrb[2].mxu1  ;;  %v666_v62 = vadd.f32 %v665_v56, %v2954_v55  ;;  %v2969_v6 = vadd.f32 %v246_v4, %v2954_v55  ;;  %v248_v7 = vpop.f32.mrb[2].mxu0 }
  0xde   :  { %v668_v60 = vadd.f32 %v667_v58, %v2952_v53  ;;  %v669_v61 = vpop.f32.mrb[3].mxu1  ;;  %v2972_v8 = vadd.f32 %v248_v7, %v2952_v53  ;;  %v250_v9 = vpop.f32.mrb[3].mxu0 }
  0xdf   :  { %v670_v63 = vadd.f32 %v669_v61, %v2954_v55  ;;  %v2975_v11 = vadd.f32 %v250_v9, %v2954_v55  ;;  %v2401_v61 = vld [vmem:[%s3932_s0 + $0x170] sm:$0xff]  }
  0xe0   :  { %v822_v2 = vpack.c.bf16 %v668_v60, %v664_v59  ;;  %2197 = vmatmul.mubr.msk.bf16.gmra.mrb[108].mxu1 %vm154_vm1, %v2398_v57 }
  0xe1   :  { %v823_v5 = vpack.c.bf16 %v670_v63, %v666_v62  ;;  %1297 = vmatprep.mubr.bf16.mxu1 %v3938_v1 }
  0xe3   :  { %2427 = vtanh.bf16 %v823_v5  ;;  %v673_v10 = vpop.f32.mrb[4].mxu1  ;;  %v254_v22 = vpop.f32.mrb[4].mxu0 }
  0xe4   :  { %2429 = vtanh.bf16 %v822_v2  ;;  %v675_v12 = vpop.f32.mrb[5].mxu1  ;;  %v674_v17 = vadd.f32 %v673_v10, %v2952_v53  ;;  %v2990_v24 = vadd.f32 %v254_v22, %v2952_v53  ;;  %v256_v25 = vpop.f32.mrb[5].mxu0 }
  0xe5   :  { %v677_v15 = vpop.f32.mrb[6].mxu1  ;;  %v676_v20 = vadd.f32 %v675_v12, %v2954_v55  ;;  %v2999_v28 = vadd.f32 %v256_v25, %v2954_v55  ;;  %v258_v29 = vpop.f32.mrb[6].mxu0 }
  0xe6   :  { %v678_v18 = vadd.f32 %v677_v15, %v2952_v53  ;;  %v679_v19 = vpop.f32.mrb[7].mxu1  ;;  %v3004_v31 = vadd.f32 %v258_v29, %v2952_v53  ;;  %v260_v32 = vpop.f32.mrb[7].mxu0 }
  0xe7   :  { %v680_v21 = vadd.f32 %v679_v19, %v2954_v55  ;;  %v3007_v34 = vadd.f32 %v260_v32, %v2954_v55 }
  0xe8   :  { %v824_v23 = vpack.c.bf16 %v678_v18, %v674_v17  ;;  %2198 = vmatmul.mubr.msk.bf16.gmra.mrb[112].mxu1 %vm154_vm1, %v2399_v13 }
  0xe9   :  { %v825_v27 = vpack.c.bf16 %v680_v21, %v676_v20  ;;  %1307 = vmatprep.mubr.bf16.mxu1 %v3938_v1 }
  0xeb   :  { %2431 = vtanh.bf16 %v825_v27  ;;  %v683_v33 = vpop.f32.mrb[8].mxu1  ;;  %v264_v47 = vpop.f32.mrb[8].mxu0 }
  0xec   :  { %2433 = vtanh.bf16 %v824_v23  ;;  %v685_v35 = vpop.f32.mrb[9].mxu1  ;;  %v684_v41 = vadd.f32 %v683_v33, %v2952_v53  ;;  %v3022_v49 = vadd.f32 %v264_v47, %v2952_v53  ;;  %v266_v50 = vpop.f32.mrb[9].mxu0 }
  0xed   :  { %v687_v38 = vpop.f32.mrb[10].mxu1  ;;  %v686_v45 = vadd.f32 %v685_v35, %v2954_v55  ;;  %v3026_v52 = vadd.f32 %v266_v50, %v2954_v55  ;;  %v268_v54 = vpop.f32.mrb[10].mxu0 }
  0xee   :  { %v2428_v40 = vpop.eup %2427  ;;  %v688_v42 = vadd.f32 %v687_v38, %v2952_v53  ;;  %v689_v43 = vpop.f32.mrb[11].mxu1  ;;  %v3029_v56 = vadd.f32 %v268_v54, %v2952_v53 }
  0xef   :  { %v2430_v44 = vpop.eup %2429  ;;  %v690_v46 = vadd.f32 %v689_v43, %v2954_v55  ;;  %895 = vmatprep.subr.bf16.mxu0 %v2428_v40  ;;  %v270_v57 = vpop.f32.mrb[11].mxu0 }
  0xf0   :  { %v826_v48 = vpack.c.bf16 %v688_v42, %v684_v41  ;;  %896 = vmatpush1.bf16.msra.mxu0 %v2430_v44  ;;  %2199 = vmatmul.mubr.msk.bf16.gmra.mrb[116].mxu1 %vm154_vm1, %v2400_v36  ;;  %v3032_v59 = vadd.f32 %v270_v57, %v2954_v55 }
  0xf1   :  { %v827_v51 = vpack.c.bf16 %v690_v46, %v686_v45  ;;  %1317 = vmatprep.mubr.bf16.mxu1 %v3938_v1 }
  0xf3   :  { %2435 = vtanh.bf16 %v827_v51  ;;  %v693_v58 = vpop.f32.mrb[12].mxu1  ;;  %v274_v13 = vpop.f32.mrb[12].mxu0 }
  0xf4   :  { %2437 = vtanh.bf16 %v826_v48  ;;  %v695_v60 = vpop.f32.mrb[13].mxu1  ;;  %v694_v4 = vadd.f32 %v693_v58, %v2952_v53  ;;  %v3047_v17 = vadd.f32 %v274_v13, %v2952_v53  ;;  %v276_v18 = vpop.f32.mrb[13].mxu0 }
  0xf5   :  { %v697_v63 = vpop.f32.mrb[14].mxu1  ;;  %v696_v10 = vadd.f32 %v695_v60, %v2954_v55  ;;  %v3051_v20 = vadd.f32 %v276_v18, %v2954_v55  ;;  %v278_v21 = vpop.f32.mrb[14].mxu0 }
  0xf6   :  { %v2432_v2 = vpop.eup %2431  ;;  %v698_v5 = vadd.f32 %v697_v63, %v2952_v53  ;;  %v699_v7 = vpop.f32.mrb[15].mxu1  ;;  %v3054_v22 = vadd.f32 %v278_v21, %v2952_v53 }
  0xf7   :  { %v2434_v9 = vpop.eup %2433  ;;  %v700_v12 = vadd.f32 %v699_v7, %v2954_v55  ;;  %897 = vmatprep.subr.bf16.mxu0 %v2432_v2  ;;  %v280_v23 = vpop.f32.mrb[15].mxu0  ;;  %v2403_v2 = vld [vmem:[%s3932_s0 + $0x180] sm:$0xff]  }
  0xf8   :  { %v828_v15 = vpack.c.bf16 %v698_v5, %v694_v4  ;;  %898 = vmatpush1.bf16.msra.mxu0 %v2434_v9  ;;  %2200 = vmatmul.mubr.msk.bf16.gmra.mrb[120].mxu1 %vm154_vm1, %v2401_v61  ;;  %v3057_v27 = vadd.f32 %v280_v23, %v2954_v55 }
  0xf9   :  { %v829_v19 = vpack.c.bf16 %v700_v12, %v696_v10  ;;  %1327 = vmatprep.mubr.bf16.mxu1 %v3938_v1 }
  0xfb   :  { %2439 = vtanh.bf16 %v829_v19  ;;  %v703_v25 = vpop.f32.mrb[16].mxu1  ;;  %v284_v45 = vpop.f32.mrb[16].mxu0 }
  0xfc   :  { %2441 = vtanh.bf16 %v828_v15  ;;  %v705_v29 = vpop.f32.mrb[17].mxu1  ;;  %v704_v38 = vadd.f32 %v703_v25, %v2952_v53  ;;  %v3072_v47 = vadd.f32 %v284_v45, %v2952_v53  ;;  %v286_v48 = vpop.f32.mrb[17].mxu0 }
  0xfd   :  { %v707_v33 = vpop.f32.mrb[18].mxu1  ;;  %v706_v43 = vadd.f32 %v705_v29, %v2954_v55  ;;  %v3076_v51 = vadd.f32 %v286_v48, %v2954_v55  ;;  %v288_v54 = vpop.f32.mrb[18].mxu0 }
  0xfe   :  { %v2436_v36 = vpop.eup %2435  ;;  %v708_v40 = vadd.f32 %v707_v33, %v2952_v53  ;;  %v709_v41 = vpop.f32.mrb[19].mxu1  ;;  %v3079_v57 = vadd.f32 %v288_v54, %v2952_v53 }
  0xff   :  { %v2438_v42 = vpop.eup %2437  ;;  %v710_v44 = vadd.f32 %v709_v41, %v2954_v55  ;;  %899 = vmatprep.subr.bf16.mxu0 %v2436_v36  ;;  %v290_v58 = vpop.f32.mrb[19].mxu0 }
 0x100   :  { %v830_v46 = vpack.c.bf16 %v708_v40, %v704_v38  ;;  %900 = vmatpush1.bf16.msra.mxu0 %v2438_v42  ;;  %2201 = vmatmul.mubr.msk.bf16.gmra.mrb[124].mxu1 %vm154_vm1, %v2402_v30  ;;  %v3082_v61 = vadd.f32 %v290_v58, %v2954_v55 }
 0x101   :  { %v831_v50 = vpack.c.bf16 %v710_v44, %v706_v43  ;;  %1647 = vmatprep.mubr.bf16.mxu1 %v3938_v1  ;;  %v2404_v44 = vld [vmem:[%s3932_s0 + $0x188] sm:$0xff]  }
 0x103   :  { %2443 = vtanh.bf16 %v831_v50  ;;  %v713_v60 = vpop.f32.mrb[20].mxu1  ;;  %v294_v21 = vpop.f32.mrb[20].mxu0 }
 0x104   :  { %2445 = vtanh.bf16 %v830_v46  ;;  %v715_v63 = vpop.f32.mrb[21].mxu1  ;;  %v714_v10 = vadd.f32 %v713_v60, %v2952_v53  ;;  %v3097_v25 = vadd.f32 %v294_v21, %v2952_v53  ;;  %v296_v29 = vpop.f32.mrb[21].mxu0 }
 0x105   :  { %v717_v5 = vpop.f32.mrb[22].mxu1  ;;  %v716_v18 = vadd.f32 %v715_v63, %v2954_v55  ;;  %v3101_v33 = vadd.f32 %v296_v29, %v2954_v55  ;;  %v298_v36 = vpop.f32.mrb[22].mxu0 }
 0x106   :  { %v2440_v9 = vpop.eup %2439  ;;  %v718_v12 = vadd.f32 %v717_v5, %v2952_v53  ;;  %v719_v13 = vpop.f32.mrb[23].mxu1  ;;  %v3104_v38 = vadd.f32 %v298_v36, %v2952_v53 }
 0x107   :  { %v2442_v15 = vpop.eup %2441  ;;  %v720_v19 = vadd.f32 %v719_v13, %v2954_v55  ;;  %901 = vmatprep.subr.bf16.mxu0 %v2440_v9  ;;  %v300_v40 = vpop.f32.mrb[23].mxu0 }
 0x108   :  { %v832_v23 = vpack.c.bf16 %v718_v12, %v714_v10  ;;  %902 = vmatpush1.bf16.msra.mxu0 %v2442_v15  ;;  %2254 = vmatmul.mubr.msk.bf16.vlgmr.msra.gmra.mrb[128].mxu1 %vm154_vm1, %v2403_v2  ;;  %v3107_v42 = vadd.f32 %v300_v40, %v2954_v55  ;;  %v2405_v40 = vld [vmem:[%s3932_s0 + $0x190] sm:$0xff]  }
 0x109   :  { %v833_v30 = vpack.c.bf16 %v720_v19, %v716_v18  ;;  %1657 = vmatprep.mubr.bf16.mxu1 %v3938_v1 }
 0x10b   :  { %2447 = vtanh.bf16 %v833_v30  ;;  %v723_v41 = vpop.f32.mrb[24].mxu1  ;;  %v304_v9 = vpop.f32.mrb[24].mxu0 }
 0x10c   :  { %2449 = vtanh.bf16 %v832_v23  ;;  %v725_v43 = vpop.f32.mrb[25].mxu1  ;;  %v724_v54 = vadd.f32 %v723_v41, %v2952_v53  ;;  %v3122_v12 = vadd.f32 %v304_v9, %v2952_v53  ;;  %v306_v13 = vpop.f32.mrb[25].mxu0 }
 0x10d   :  { %v727_v46 = vpop.f32.mrb[26].mxu1  ;;  %v726_v2 = vadd.f32 %v725_v43, %v2954_v55  ;;  %v3126_v18 = vadd.f32 %v306_v13, %v2954_v55  ;;  %v308_v19 = vpop.f32.mrb[26].mxu0 }
 0x10e   :  { %v2444_v50 = vpop.eup %2443  ;;  %v728_v58 = vadd.f32 %v727_v46, %v2952_v53  ;;  %v729_v60 = vpop.f32.mrb[27].mxu1  ;;  %v3129_v21 = vadd.f32 %v308_v19, %v2952_v53 }
 0x10f   :  { %v2446_v63 = vpop.eup %2445  ;;  %v730_v5 = vadd.f32 %v729_v60, %v2954_v55  ;;  %903 = vmatprep.subr.bf16.mxu0 %v2444_v50  ;;  %v310_v23 = vpop.f32.mrb[27].mxu0 }
 0x110   :  { %v834_v10 = vpack.c.bf16 %v728_v58, %v724_v54  ;;  %904 = vmatpush1.bf16.msra.mxu0 %v2446_v63  ;;  %2255 = vmatmul.mubr.msk.bf16.gmra.mrb[132].mxu1 %vm154_vm1, %v2404_v44  ;;  %v3132_v30 = vadd.f32 %v310_v23, %v2954_v55 }
 0x111   :  { %v835_v15 = vpack.c.bf16 %v730_v5, %v726_v2  ;;  %1667 = vmatprep.mubr.bf16.mxu1 %v3938_v1 }
 0x113   :  { %2451 = vtanh.bf16 %v835_v15  ;;  %v733_v29 = vpop.f32.mrb[28].mxu1  ;;  %v314_v5 = vpop.f32.mrb[28].mxu0 }
 0x114   :  { %2453 = vtanh.bf16 %v834_v10  ;;  %v735_v36 = vpop.f32.mrb[29].mxu1  ;;  %v734_v50 = vadd.f32 %v733_v29, %v2952_v53  ;;  %v3147_v10 = vadd.f32 %v314_v5, %v2952_v53  ;;  %v316_v13 = vpop.f32.mrb[29].mxu0 }
 0x115   :  { %v737_v43 = vpop.f32.mrb[30].mxu1  ;;  %v736_v63 = vadd.f32 %v735_v36, %v2954_v55  ;;  %v3151_v19 = vadd.f32 %v316_v13, %v2954_v55  ;;  %v318_v23 = vpop.f32.mrb[30].mxu0 }
 0x116   :  { %v2448_v46 = vpop.eup %2447  ;;  %v738_v54 = vadd.f32 %v737_v43, %v2952_v53  ;;  %v739_v58 = vpop.f32.mrb[31].mxu1  ;;  %v3154_v29 = vadd.f32 %v318_v23, %v2952_v53 }
 0x117   :  { %v2450_v60 = vpop.eup %2449  ;;  %v740_v2 = vadd.f32 %v739_v58, %v2954_v55  ;;  %905 = vmatprep.subr.bf16.mxu0 %v2448_v46  ;;  %v320_v36 = vpop.f32.mrb[31].mxu0 }
 0x118   :  { %v836_v9 = vpack.c.bf16 %v738_v54, %v734_v50  ;;  %906 = vmatpush1.bf16.msra.mxu0 %v2450_v60  ;;  %2256 = vmatmul.mubr.msk.bf16.gmra.mrb[136].mxu1 %vm154_vm1, %v2405_v40  ;;  %v3157_v46 = vadd.f32 %v320_v36, %v2954_v55  ;;  %v2406_v50 = vld [vmem:[%s3932_s0 + $0x198] sm:$0xff]  }
 0x119   :  { %v837_v15 = vpack.c.bf16 %v740_v2, %v736_v63  ;;  %1677 = vmatprep.mubr.bf16.mxu1 %v3938_v1 }
 0x11b   :  { %2455 = vtanh.bf16 %v837_v15  ;;  %v743_v43 = vpop.f32.mrb[32].mxu1  ;;  %v324_v36 = vpop.f32.mrb[32].mxu0 }
 0x11c   :  { %2457 = vtanh.bf16 %v836_v9  ;;  %v745_v40 = vpop.f32.mrb[33].mxu1  ;;  %v744_v2 = vadd.f32 %v743_v43, %v2952_v53  ;;  %v3172_v54 = vadd.f32 %v324_v36, %v2952_v53  ;;  %v326_v60 = vpop.f32.mrb[33].mxu0 }
 0x11d   :  { %v747_v58 = vpop.f32.mrb[34].mxu1  ;;  %v746_v9 = vadd.f32 %v745_v40, %v2954_v55  ;;  %v3176_v43 = vadd.f32 %v326_v60, %v2954_v55 }
 0x11e   :  { %v2452_v63 = vpop.eup %2451  ;;  %v748_v5 = vadd.f32 %v747_v58, %v2952_v53  ;;  %v749_v13 = vpop.f32.mrb[35].mxu1 }
 0x11f   :  { %v2454_v15 = vpop.eup %2453  ;;  %v750_v23 = vadd.f32 %v749_v13, %v2954_v55  ;;  %907 = vmatprep.subr.bf16.mxu0 %v2452_v63  ;;  %v328_v58 = vpop.f32.mrb[34].mxu0  ;;  %v2407_v13 = vld [vmem:[%s3932_s0 + $0x1a0] sm:$0xff]  }
 0x120   :  { %v838_v41 = vpack.c.bf16 %v748_v5, %v744_v2  ;;  %908 = vmatpush1.bf16.msra.mxu0 %v2454_v15  ;;  %2257 = vmatmul.mubr.msk.bf16.gmra.mrb[140].mxu1 %vm154_vm1, %v2406_v50  ;;  %v3179_v40 = vadd.f32 %v328_v58, %v2952_v53  ;;  %v330_v63 = vpop.f32.mrb[35].mxu0 }
 0x121   :  { %v839_v44 = vpack.c.bf16 %v750_v23, %v746_v9  ;;  %1687 = vmatprep.mubr.bf16.mxu1 %v3938_v1  ;;  %v3182_v5 = vadd.f32 %v330_v63, %v2954_v55 }
 0x123   :  { %2459 = vtanh.bf16 %v839_v44  ;;  %v753_v2 = vpop.f32.mrb[36].mxu1  ;;  %v334_v48 = vpop.f32.mrb[36].mxu0 }
 0x124   :  { %2461 = vtanh.bf16 %v838_v41  ;;  %v755_v50 = vpop.f32.mrb[37].mxu1  ;;  %v754_v44 = vadd.f32 %v753_v2, %v2952_v53  ;;  %v3197_v60 = vadd.f32 %v334_v48, %v2952_v53  ;;  %v336_v9 = vpop.f32.mrb[37].mxu0 }
 0x125   :  { %v757_v15 = vpop.f32.mrb[38].mxu1  ;;  %v756_v41 = vadd.f32 %v755_v50, %v2954_v55  ;;  %v3201_v2 = vadd.f32 %v336_v9, %v2954_v55 }
 0x126   :  { %v2456_v23 = vpop.eup %2455  ;;  %v758_v36 = vadd.f32 %v757_v15, %v2952_v53  ;;  %v759_v58 = vpop.f32.mrb[39].mxu1 }
 0x127   :  { %v2458_v63 = vpop.eup %2457  ;;  %v760_v45 = vadd.f32 %v759_v58, %v2954_v55  ;;  %909 = vmatprep.subr.bf16.mxu0 %v2456_v23  ;;  %v338_v15 = vpop.f32.mrb[38].mxu0 }
 0x128   :  { %v840_v4 = vpack.c.bf16 %v758_v36, %v754_v44  ;;  %910 = vmatpush1.bf16.msra.mxu0 %v2458_v63  ;;  %2258 = vmatmul.mubr.msk.bf16.gmra.mrb[144].mxu1 %vm154_vm1, %v2407_v13  ;;  %v3204_v50 = vadd.f32 %v338_v15, %v2952_v53  ;;  %v340_v23 = vpop.f32.mrb[39].mxu0 }
 0x129   :  { %v841_v7 = vpack.c.bf16 %v760_v45, %v756_v41  ;;  %1697 = vmatprep.mubr.bf16.mxu1 %v3938_v1  ;;  %v3207_v36 = vadd.f32 %v340_v23, %v2954_v55  ;;  %v2408_v45 = vld [vmem:[%s3932_s0 + $0x1a8] sm:$0xff]  }
 0x12b   :  { %2463 = vtanh.bf16 %v841_v7  ;;  %v763_v44 = vpop.f32.mrb[40].mxu1  ;;  %v344_v35 = vpop.f32.mrb[40].mxu0 }
 0x12c   :  { %2465 = vtanh.bf16 %v840_v4  ;;  %v765_v48 = vpop.f32.mrb[41].mxu1  ;;  %v764_v7 = vadd.f32 %v763_v44, %v2952_v53  ;;  %v3222_v13 = vadd.f32 %v344_v35, %v2952_v53  ;;  %v346_v58 = vpop.f32.mrb[41].mxu0 }
 0x12d   :  { %v767_v9 = vpop.f32.mrb[42].mxu1  ;;  %v766_v4 = vadd.f32 %v765_v48, %v2954_v55  ;;  %v3226_v44 = vadd.f32 %v346_v58, %v2954_v55 }
 0x12e   :  { %v2460_v63 = vpop.eup %2459  ;;  %v768_v41 = vadd.f32 %v767_v9, %v2952_v53  ;;  %v769_v15 = vpop.f32.mrb[43].mxu1  ;;  %3956 = vst [vmem:[#allocation2_spill] sm:$0xff] %v3222_v13 }
 0x12f   :  { %v2462_v23 = vpop.eup %2461  ;;  %v770_v32 = vadd.f32 %v769_v15, %v2954_v55  ;;  %911 = vmatprep.subr.bf16.mxu0 %v2460_v63  ;;  %3957 = vst [vmem:[#allocation3_spill] sm:$0xff] %v3226_v44  ;;  %v348_v9 = vpop.f32.mrb[42].mxu0 }
 0x130   :  { %v842_v62 = vpack.c.bf16 %v768_v41, %v764_v7  ;;  %912 = vmatpush1.bf16.msra.mxu0 %v2462_v23  ;;  %2259 = vmatmul.mubr.msk.bf16.gmra.mrb[148].mxu1 %vm154_vm1, %v2408_v45  ;;  %v3229_v48 = vadd.f32 %v348_v9, %v2952_v53  ;;  %v350_v63 = vpop.f32.mrb[43].mxu0 }
 0x131   :  { %v843_v0 = vpack.c.bf16 %v770_v32, %v766_v4  ;;  %1707 = vmatprep.mubr.bf16.mxu1 %v3938_v1  ;;  %v3232_v41 = vadd.f32 %v350_v63, %v2954_v55  ;;  %v2409_v32 = vld [vmem:[%s3932_s0 + $0x1b0] sm:$0xff]  }
 0x132   :  { %3958 = vst [vmem:[#allocation4_spill] sm:$0xff] %v3229_v48 }
 0x133   :  { %2467 = vtanh.bf16 %v843_v0  ;;  %v773_v7 = vpop.f32.mrb[44].mxu1  ;;  %v354_v39 = vpop.f32.mrb[44].mxu0 }
 0x134   :  { %2469 = vtanh.bf16 %v842_v62  ;;  %v775_v35 = vpop.f32.mrb[45].mxu1  ;;  %v774_v0 = vadd.f32 %v773_v7, %v2952_v53  ;;  %v3247_v45 = vadd.f32 %v354_v39, %v2952_v53  ;;  %v356_v15 = vpop.f32.mrb[45].mxu0 }
 0x135   :  { %v777_v58 = vpop.f32.mrb[46].mxu1  ;;  %v776_v62 = vadd.f32 %v775_v35, %v2954_v55  ;;  %v3251_v7 = vadd.f32 %v356_v15, %v2954_v55 }
 0x136   :  { %v2464_v23 = vpop.eup %2463  ;;  %v778_v4 = vadd.f32 %v777_v58, %v2952_v53  ;;  %v779_v9 = vpop.f32.mrb[47].mxu1  ;;  %3959 = vst [vmem:[#allocation5_spill] sm:$0xff] %v3247_v45 }
 0x137   :  { %v2466_v63 = vpop.eup %2465  ;;  %v780_v37 = vadd.f32 %v779_v9, %v2954_v55  ;;  %913 = vmatprep.subr.bf16.mxu0 %v2464_v23  ;;  %3960 = vst [vmem:[#allocation6_spill] sm:$0xff] %v3251_v7  ;;  %v358_v58 = vpop.f32.mrb[46].mxu0 }
 0x138   :  { %v844_v14 = vpack.c.bf16 %v778_v4, %v774_v0  ;;  %914 = vmatpush1.bf16.msra.mxu0 %v2466_v63  ;;  %2260 = vmatmul.mubr.msk.bf16.gmra.mrb[152].mxu1 %vm154_vm1, %v2409_v32  ;;  %v3254_v35 = vadd.f32 %v358_v58, %v2952_v53  ;;  %v360_v23 = vpop.f32.mrb[47].mxu0 }
 0x139   :  { %v845_v16 = vpack.c.bf16 %v780_v37, %v776_v62  ;;  %1717 = vmatprep.mubr.bf16.mxu1 %v3938_v1  ;;  %v3257_v4 = vadd.f32 %v360_v23, %v2954_v55  ;;  %v2410_v37 = vld [vmem:[%s3932_s0 + $0x1b8] sm:$0xff]  }
 0x13a   :  { %3961 = vst [vmem:[#allocation7_spill] sm:$0xff] %v3254_v35 }
 0x13b   :  { %2471 = vtanh.bf16 %v845_v16  ;;  %v783_v0 = vpop.f32.mrb[48].mxu1  ;;  %3962 = vst [vmem:[#allocation8_spill] sm:$0xff] %v3257_v4  ;;  %v364_v13 = vpop.f32.mrb[48].mxu0 }
 0x13c   :  { %2473 = vtanh.bf16 %v844_v14  ;;  %v785_v39 = vpop.f32.mrb[49].mxu1  ;;  %v784_v16 = vadd.f32 %v783_v0, %v2952_v53  ;;  %v3272_v32 = vadd.f32 %v364_v13, %v2952_v53  ;;  %v366_v9 = vpop.f32.mrb[49].mxu0  ;;  %v3964_v0 = vmov 0  }
 0x13d   :  { %v787_v15 = vpop.f32.mrb[50].mxu1  ;;  %v786_v14 = vadd.f32 %v785_v39, %v2954_v55  ;;  %v368_v35 = vpop.f32.mrb[50].mxu0 }
 0x13e   :  { %v2468_v63 = vpop.eup %2467  ;;  %v788_v62 = vadd.f32 %v787_v15, %v2952_v53  ;;  %v789_v58 = vpop.f32.mrb[51].mxu1  ;;  %3963 = vst [vmem:[#allocation9_spill] sm:$0xff] %v3272_v32  ;;  %v3276_v15 = vadd.f32 %v366_v9, %v2954_v55  ;;  %v3279_v39 = vadd.f32 %v368_v35, %v2952_v53 }
 0x13f   :  { %v2470_v23 = vpop.eup %2469  ;;  %v790_v1 = vadd.f32 %v789_v58, %v2954_v55  ;;  %915 = vmatprep.subr.bf16.mxu0 %v2468_v63  ;;  %v370_v63 = vpop.f32.mrb[51].mxu0 }
 0x140   :  { %v846_v48 = vpack.c.bf16 %v788_v62, %v784_v16  ;;  %916 = vmatpush1.bf16.msra.mxu0 %v2470_v23  ;;  %2261 = vmatmul.mubr.msk.bf16.gmra.mrb[156].mxu1 %vm154_vm1, %v2410_v37  ;;  %3965 = vst [vmem:[#allocation10_spill] sm:$0xff] %v3276_v15  ;;  %3966 = vst [vmem:[#allocation11_spill] sm:$0xff] %v3279_v39  ;;  %v3282_v62 = vadd.f32 %v370_v63, %v2954_v55 }
 0x141   :  { %v847_v45 = vpack.c.bf16 %v790_v1, %v786_v14  ;;  %1727 = vmatprep.mubr.bf16.mxu1 %v3964_v0  ;;  %v2411_v1 = vld [vmem:[%s3932_s0 + $0x1c0] sm:$0xff]  }
 0x142   :  { %3967 = vst [vmem:[#allocation12_spill] sm:$0xff] %v3282_v62 }
 0x143   :  { %2475 = vtanh.bf16 %v847_v45  ;;  %v793_v16 = vpop.f32.mrb[52].mxu1  ;;  %v374_v4 = vpop.f32.mrb[52].mxu0 }
 0x144   :  { %2477 = vtanh.bf16 %v846_v48  ;;  %v795_v13 = vpop.f32.mrb[53].mxu1  ;;  %v794_v45 = vadd.f32 %v793_v16, %v2952_v53  ;;  %v3297_v37 = vadd.f32 %v374_v4, %v2952_v53  ;;  %v376_v35 = vpop.f32.mrb[53].mxu0 }
 0x145   :  { %v797_v9 = vpop.f32.mrb[54].mxu1  ;;  %v796_v48 = vadd.f32 %v795_v13, %v2954_v55  ;;  %v3301_v16 = vadd.f32 %v376_v35, %v2954_v55 }
 0x146   :  { %v2472_v58 = vpop.eup %2471  ;;  %v798_v23 = vadd.f32 %v797_v9, %v2952_v53  ;;  %v799_v14 = vpop.f32.mrb[55].mxu1  ;;  %3968 = vst [vmem:[#allocation13_spill] sm:$0xff] %v3297_v37 }
 0x147   :  { %v2474_v63 = vpop.eup %2473  ;;  %v800_v7 = vadd.f32 %v799_v14, %v2954_v55  ;;  %917 = vmatprep.subr.bf16.mxu0 %v2472_v58  ;;  %3969 = vst [vmem:[#allocation14_spill] sm:$0xff] %v3301_v16  ;;  %v378_v9 = vpop.f32.mrb[54].mxu0 }
 0x148   :  { %v848_v44 = vpack.c.bf16 %v798_v23, %v794_v45  ;;  %918 = vmatpush1.bf16.msra.mxu0 %v2474_v63  ;;  %2262 = vmatmul.mubr.msk.bf16.gmra.mrb[160].mxu1 %vm154_vm1, %v2411_v1  ;;  %v3304_v13 = vadd.f32 %v378_v9, %v2952_v53  ;;  %v380_v58 = vpop.f32.mrb[55].mxu0 }
 0x149   :  { %v849_v32 = vpack.c.bf16 %v800_v7, %v796_v48  ;;  %1737 = vmatprep.mubr.bf16.mxu1 %v3964_v0  ;;  %v3307_v23 = vadd.f32 %v380_v58, %v2954_v55  ;;  %v2412_v7 = vld [vmem:[%s3932_s0 + $0x1c8] sm:$0xff]  }
 0x14a   :  { %3970 = vst [vmem:[#allocation15_spill] sm:$0xff] %v3304_v13 }
 0x14b   :  { %2479 = vtanh.bf16 %v849_v32  ;;  %v803_v45 = vpop.f32.mrb[56].mxu1  ;;  %3971 = vst [vmem:[#allocation16_spill] sm:$0xff] %v3307_v23  ;;  %v384_v15 = vpop.f32.mrb[56].mxu0 }
 0x14c   :  { %2481 = vtanh.bf16 %v848_v44  ;;  %v805_v4 = vpop.f32.mrb[57].mxu1  ;;  %v804_v32 = vadd.f32 %v803_v45, %v2952_v53  ;;  %v3322_v1 = vadd.f32 %v384_v15, %v2952_v53  ;;  %v386_v14 = vpop.f32.mrb[57].mxu0 }
 0x14d   :  { %v807_v35 = vpop.f32.mrb[58].mxu1  ;;  %v806_v44 = vadd.f32 %v805_v4, %v2954_v55  ;;  %v3326_v45 = vadd.f32 %v386_v14, %v2954_v55 }
 0x14e   :  { %v2476_v63 = vpop.eup %2475  ;;  %v808_v48 = vadd.f32 %v807_v35, %v2952_v53  ;;  %v809_v9 = vpop.f32.mrb[59].mxu1  ;;  %3972 = vst [vmem:[#allocation17_spill] sm:$0xff] %v3322_v1 }
 0x14f   :  { %v2478_v58 = vpop.eup %2477  ;;  %v810_v39 = vadd.f32 %v809_v9, %v2954_v55  ;;  %919 = vmatprep.subr.bf16.mxu0 %v2476_v63  ;;  %v388_v35 = vpop.f32.mrb[58].mxu0 }
 0x150   :  { %v850_v62 = vpack.c.bf16 %v808_v48, %v804_v32  ;;  %920 = vmatpush1.bf16.msra.mxu0 %v2478_v58  ;;  %2263 = vmatmul.mubr.msk.bf16.gmra.mrb[164].mxu1 %vm154_vm1, %v2412_v7  ;;  %v3329_v4 = vadd.f32 %v388_v35, %v2952_v53  ;;  %v390_v63 = vpop.f32.mrb[59].mxu0 }
 0x151   :  { %v851_v37 = vpack.c.bf16 %v810_v39, %v806_v44  ;;  %1747 = vmatprep.mubr.bf16.mxu1 %v3964_v0  ;;  %v3332_v48 = vadd.f32 %v390_v63, %v2954_v55  ;;  %v2413_v39 = vld [vmem:[%s3932_s0 + $0x1d0] sm:$0xff]  }
 0x153   :  { %2483 = vtanh.bf16 %v851_v37  ;;  %v813_v32 = vpop.f32.mrb[60].mxu1  ;;  %v394_v16 = vpop.f32.mrb[60].mxu0 }
 0x154   :  { %2485 = vtanh.bf16 %v850_v62  ;;  %v815_v15 = vpop.f32.mrb[61].mxu1  ;;  %v814_v37 = vadd.f32 %v813_v32, %v2952_v53  ;;  %v3347_v7 = vadd.f32 %v394_v16, %v2952_v53  ;;  %v396_v9 = vpop.f32.mrb[61].mxu0 }
 0x155   :  { %v817_v14 = vpop.f32.mrb[62].mxu1  ;;  %v816_v62 = vadd.f32 %v815_v15, %v2954_v55  ;;  %v3351_v32 = vadd.f32 %v396_v9, %v2954_v55  ;;  %v3973_v15 = vpack.c.bf16 %v2975_v11, %v2969_v6  ;;  %v2414_v9 = vld [vmem:[%s3932_s0 + $0x1d8] sm:$0xff]  }
 0x156   :  { %v2480_v58 = vpop.eup %2479  ;;  %v818_v44 = vadd.f32 %v817_v14, %v2952_v53  ;;  %v819_v35 = vpop.f32.mrb[63].mxu1 }
 0x157   :  { %v2482_v63 = vpop.eup %2481  ;;  %v820_v13 = vadd.f32 %v819_v35, %v2954_v55  ;;  %921 = vmatprep.subr.bf16.mxu0 %v2480_v58  ;;  %v398_v14 = vpop.f32.mrb[62].mxu0  ;;  %2487 = vtanh.bf16 %v3973_v15 }
 0x158   :  { %v852_v23 = vpack.c.bf16 %v818_v44, %v814_v37  ;;  %922 = vmatpush1.bf16.msra.mxu0 %v2482_v63  ;;  %2264 = vmatmul.mubr.msk.bf16.gmra.mrb[168].mxu1 %vm154_vm1, %v2413_v39  ;;  %v3357_v58 = vadd.f32 %v398_v14, %v2952_v53  ;;  %v400_v37 = vpop.f32.mrb[63].mxu0 }
 0x159   :  { %v853_v1 = vpack.c.bf16 %v820_v13, %v816_v62  ;;  %1757 = vmatprep.mubr.bf16.mxu1 %v3964_v0  ;;  %v3360_v16 = vadd.f32 %v400_v37, %v2954_v55  ;;  %v3975_v37 = vpack.c.bf16 %v3007_v34, %v2999_v28  ;;  %v3977_v28 = vpack.c.bf16 %v3032_v59, %v3026_v52 }
 0x15b   :  { %2489 = vtanh.bf16 %v853_v1  ;;  %v1179_v39 = vpop.f32.mrb[64].mxu1  ;;  %v434_v11 = vpack.c.bf16 %v3360_v16, %v3351_v32  ;;  %v3974_v1 = vpack.c.bf16 %v2972_v8, %v2965_v3 }
 0x15c   :  { %2491 = vtanh.bf16 %v852_v23  ;;  %v1181_v13 = vpop.f32.mrb[65].mxu1  ;;  %v3373_v63 = vadd.f32 %v1179_v39, %v2952_v53  ;;  %v3976_v39 = vpack.c.bf16 %v3004_v31, %v2990_v24  ;;  %v3978_v24 = vpack.c.bf16 %v3029_v56, %v3022_v49 }
 0x15d   :  { %v1183_v6 = vpop.f32.mrb[66].mxu1  ;;  %2493 = vtanh.bf16 %v3974_v1  ;;  %v3379_v15 = vadd.f32 %v1181_v13, %v2954_v55  ;;  %v3405_v1 = vld [vmem:[%s3934_s1] sm:$0xff]  ;;  %v2133_v49 = vcombine.low %v2995_v26, %v2995_v26  ;;  %v3980_v26 = vpack.c.bf16 %v3054_v22, %v3047_v17 }
 0x15e   :  { %v2484_v35 = vpop.eup %2483  ;;  %v3376_v23 = vadd.f32 %v1183_v6, %v2952_v53  ;;  %v1185_v62 = vpop.f32.mrb[67].mxu1  ;;  %2495 = vtanh.bf16 %v3975_v37  ;;  %v2415_v6 = vld [vmem:[%s3932_s0 + $0x1e0] sm:$0xff]   ;;  %v3982_v17 = vpack.c.bf16 %v3079_v57, %v3072_v47 }
 0x15f   :  { %v2486_v14 = vpop.eup %2485  ;;  %v3385_v44 = vadd.f32 %v1185_v62, %v2954_v55  ;;  %923 = vmatprep.subr.bf16.mxu0 %v2484_v35  ;;  %2497 = vtanh.bf16 %v3976_v39  ;;  %v3979_v39 = vpack.c.bf16 %v3057_v27, %v3051_v20 }
 0x160   :  { %v1338_v3 = vpack.c.bf16 %v3376_v23, %v3373_v63  ;;  %924 = vmatpush1.bf16.msra.mxu0 %v2486_v14  ;;  %2265 = vmatmul.mubr.msk.bf16.gmra.mrb[172].mxu1 %vm154_vm1, %v2414_v9  ;;  %2499 = vtanh.bf16 %v3977_v28 }
 0x161   :  { %v1339_v8 = vpack.c.bf16 %v3385_v44, %v3379_v15  ;;  %1767 = vmatprep.mubr.bf16.mxu1 %v3964_v0  ;;  %2501 = vtanh.bf16 %v3978_v24  ;;  %v2418_v24 = vld [vmem:[%s3932_s0 + $0x1e8] sm:$0xff]  }
 0x162   :  { %v2488_v9 = vpop.eup %2487  ;;  %2503 = vtanh.bf16 %v3979_v39 }
 0x163   :  { %v1189_v34 = vpop.f32.mrb[68].mxu1  ;;  %2505 = vtanh.bf16 %v3980_v26 }
 0x164   :  { %v1191_v13 = vpop.f32.mrb[69].mxu1  ;;  %v3411_v31 = vadd.f32 %v1189_v34, %v2952_v53  ;;  %v2136_v34 = vcombine.high %v3405_v1, %v3405_v1 }
 0x165   :  { %v1193_v35 = vpop.f32.mrb[70].mxu1  ;;  %v3417_v37 = vadd.f32 %v1191_v13, %v2954_v55 }
 0x166   :  { %v2490_v62 = vpop.eup %2489  ;;  %v3414_v52 = vadd.f32 %v1193_v35, %v2952_v53  ;;  %v1195_v59 = vpop.f32.mrb[71].mxu1  ;;  %v3981_v35 = vpack.c.bf16 %v3082_v61, %v3076_v51 }
 0x167   :  { %v2492_v14 = vpop.eup %2491  ;;  %v3423_v28 = vadd.f32 %v1195_v59, %v2954_v55  ;;  %925 = vmatprep.subr.bf16.mxu0 %v2490_v62 }
 0x168   :  { %v1340_v56 = vpack.c.bf16 %v3414_v52, %v3411_v31  ;;  %926 = vmatpush1.bf16.msra.mxu0 %v2492_v14  ;;  %2266 = vmatmul.mubr.msk.bf16.gmra.mrb[176].mxu1 %vm154_vm1, %v2415_v6  ;;  %v2494_v13 = vpop.eup %2493  ;;  %2507 = vtanh.bf16 %v3981_v35 }
 0x169   :  { %v1341_v20 = vpack.c.bf16 %v3423_v28, %v3417_v37  ;;  %943 = vmatprep.subr.bf16.mxu0 %v2488_v9  ;;  %1777 = vmatprep.mubr.bf16.mxu1 %v3964_v0  ;;  %v2496_v27 = vpop.eup %2495  ;;  %2509 = vtanh.bf16 %v3982_v17  ;;  %v3654_v37 = vld [vmem:[%s3934_s1 + $0x10] sm:$0xff] }
 0x16a   :  { %v2498_v9 = vpop.eup %2497 }
 0x16b   :  { %v1199_v6 = vpop.f32.mrb[72].mxu1  ;;  %928 = vmatmul.mubr.bf16.vlgmr.msra.gmra.mrb[64].mxu0 %v2133_v49  ;;  %v2500_v14 = vpop.eup %2499  ;;  %v3983_v49 = vpack.c.bf16 %v3107_v42, %v3101_v33  ;;  %v3984_v33 = vpack.c.bf16 %v3104_v38, %v3097_v25  ;;  %v3985_v42 = vpack.c.bf16 %v3132_v30, %v3126_v18 }
 0x16c   :  { %944 = vmatpush1.bf16.msra.mxu0 %v2494_v13  ;;  %v1201_v62 = vpop.f32.mrb[73].mxu1  ;;  %975 = vmatprep.mubr.bf16.mxu0 %v2136_v34  ;;  %v3448_v22 = vadd.f32 %v1199_v6, %v2952_v53  ;;  %v2502_v57 = vpop.eup %2501  ;;  %v2419_v6 = vld [vmem:[%s3932_s0 + $0x1f0] sm:$0xff]  }
 0x16d   :  { %v1203_v59 = vpop.f32.mrb[74].mxu1  ;;  %945 = vmatprep.subr.bf16.mxu0 %v2496_v27  ;;  %v3454_v39 = vadd.f32 %v1201_v62, %v2954_v55  ;;  %2511 = vtanh.bf16 %v3983_v49  ;;  %v2504_v27 = vpop.eup %2503 }
 0x16e   :  { %v3451_v51 = vadd.f32 %v1203_v59, %v2952_v53  ;;  %v1205_v61 = vpop.f32.mrb[75].mxu1  ;;  %2513 = vtanh.bf16 %v3984_v33  ;;  %v2506_v62 = vpop.eup %2505  ;;  %v3986_v59 = vpack.c.bf16 %v3129_v21, %v3122_v12  ;;  %v2420_v33 = vld [vmem:[%s3932_s0 + $0x1f8] sm:$0xff]  }
 0x16f   :  { %v3460_v34 = vadd.f32 %v1205_v61, %v2954_v55  ;;  %2515 = vtanh.bf16 %v3985_v42 }
 0x170   :  { %v1342_v47 = vpack.c.bf16 %v3451_v51, %v3448_v22  ;;  %946 = vmatpush1.bf16.msra.mxu0 %v2498_v9  ;;  %2267 = vmatmul.mubr.msk.bf16.gmra.mrb[180].mxu1 %vm154_vm1, %v2418_v24  ;;  %2517 = vtanh.bf16 %v3986_v59  ;;  %v3992_v59 = vpack.c.bf16 %v3204_v50, %v3197_v60 }
 0x171   :  { %v1343_v13 = vpack.c.bf16 %v3460_v34, %v3454_v39  ;;  %947 = vmatprep.subr.bf16.mxu0 %v2500_v14  ;;  %1787 = vmatprep.mubr.bf16.mxu1 %v3964_v0  ;;  %v3987_v14 = vpack.c.bf16 %v3157_v46, %v3151_v19  ;;  %v3988_v19 = vpack.c.bf16 %v3154_v29, %v3147_v10 }
 0x172   :  { %v3989_v46 = vpack.c.bf16 %v3182_v5, %v3176_v43  ;;  %v2135_v39 = vcombine.low %v3405_v1, %v3405_v1 }
 0x173   :  { %v1209_v26 = vpop.f32.mrb[76].mxu1  ;;  %v2508_v9 = vpop.eup %2507  ;;  %2519 = vtanh.bf16 %v3987_v14 }
 0x174   :  { %948 = vmatpush1.bf16.msra.mxu0 %v2502_v57  ;;  %v1211_v35 = vpop.f32.mrb[77].mxu1  ;;  %v3481_v25 = vadd.f32 %v1209_v26, %v2952_v53  ;;  %v2510_v21 = vpop.eup %2509  ;;  %2521 = vtanh.bf16 %v3988_v19 }
 0x175   :  { %v1213_v24 = vpop.f32.mrb[78].mxu1  ;;  %949 = vmatprep.subr.bf16.mxu0 %v2504_v27  ;;  %v3487_v30 = vadd.f32 %v1211_v35, %v2954_v55  ;;  %2523 = vtanh.bf16 %v3989_v46  ;;  %v3990_v35 = vpack.c.bf16 %v3179_v40, %v3172_v54  ;;  %v3995_v46 = vld [vmem:[#allocation4_spill] sm:$0xff] }
 0x176   :  { %v3484_v38 = vadd.f32 %v1213_v24, %v2952_v53  ;;  %v1215_v18 = vpop.f32.mrb[79].mxu1 }
 0x177   :  { %v3493_v17 = vadd.f32 %v1215_v18, %v2954_v55  ;;  %2525 = vtanh.bf16 %v3990_v35 }
 0x178   :  { %v1344_v12 = vpack.c.bf16 %v3484_v38, %v3481_v25  ;;  %950 = vmatpush1.bf16.msra.mxu0 %v2506_v62  ;;  %2268 = vmatmul.mubr.msk.bf16.gmra.mrb[184].mxu1 %vm154_vm1, %v2419_v6  ;;  %v2512_v49 = vpop.eup %2511  ;;  %v3991_v6 = vpack.c.bf16 %v3207_v36, %v3201_v2  ;;  %v3993_v2 = vld [vmem:[#allocation3_spill] sm:$0xff] }
 0x179   :  { %v1345_v61 = vpack.c.bf16 %v3493_v17, %v3487_v30  ;;  %951 = vmatprep.subr.bf16.mxu0 %v2508_v9  ;;  %1797 = vmatprep.mubr.bf16.mxu1 %v3964_v0  ;;  %v2514_v42 = vpop.eup %2513  ;;  %v3994_v36 = vpack.c.bf16 %v3232_v41, %v3993_v2  ;;  %v4002_v2 = vld [vmem:[#allocation5_spill] sm:$0xff] }
 0x17a   :  { %v2516_v0 = vpop.eup %2515  ;;  %2527 = vtanh.bf16 %v3991_v6 }
 0x17b   :  { %v1219_v57 = vpop.f32.mrb[80].mxu1  ;;  %v2518_v40 = vpop.eup %2517  ;;  %2529 = vtanh.bf16 %v3992_v59  ;;  %v4001_v59 = vld [vmem:[#allocation7_spill] sm:$0xff] }
 0x17c   :  { %952 = vmatpush1.bf16.msra.mxu0 %v2510_v21  ;;  %v1221_v27 = vpop.f32.mrb[81].mxu1  ;;  %v3514_v10 = vadd.f32 %v1219_v57, %v2952_v53  ;;  %2531 = vtanh.bf16 %v3994_v36  ;;  %v3996_v57 = vld [vmem:[#allocation2_spill] sm:$0xff]  ;;  %v4003_v36 = vpack.c.bf16 %v4001_v59, %v4002_v2 }
 0x17d   :  { %v1223_v26 = vpop.f32.mrb[82].mxu1  ;;  %953 = vmatprep.subr.bf16.mxu0 %v2512_v49  ;;  %v3520_v5 = vadd.f32 %v1221_v27, %v2954_v55  ;;  %v3997_v27 = vpack.c.bf16 %v3995_v46, %v3996_v57 }
 0x17e   :  { %v3517_v29 = vadd.f32 %v1223_v26, %v2952_v53  ;;  %v1225_v43 = vpop.f32.mrb[83].mxu1  ;;  %v2520_v9 = vpop.eup %2519  ;;  %v3999_v26 = vld [vmem:[#allocation6_spill] sm:$0xff] }
 0x17f   :  { %v3526_v62 = vadd.f32 %v1225_v43, %v2954_v55  ;;  %v2522_v21 = vpop.eup %2521  ;;  %2533 = vtanh.bf16 %v3997_v27  ;;  %v4017_v43 = vld [vmem:[#allocation17_spill] sm:$0xff] }
 0x180   :  { %v1346_v54 = vpack.c.bf16 %v3517_v29, %v3514_v10  ;;  %954 = vmatpush1.bf16.msra.mxu0 %v2514_v42  ;;  %2269 = vmatmul.mubr.msk.bf16.gmra.mrb[188].mxu1 %vm154_vm1, %v2420_v33  ;;  %v2524_v19 = vpop.eup %2523  ;;  %v3998_v42 = vld [vmem:[#allocation8_spill] sm:$0xff] }
 0x181   :  { %v1347_v24 = vpack.c.bf16 %v3526_v62, %v3520_v5  ;;  %955 = vmatprep.subr.bf16.mxu0 %v2516_v0  ;;  %v4000_v0 = vpack.c.bf16 %v3998_v42, %v3999_v26  ;;  %v4007_v42 = vld [vmem:[#allocation11_spill] sm:$0xff]  ;;  %v4008_v26 = vld [vmem:[#allocation9_spill] sm:$0xff] }
 0x182   :  { %v2526_v6 = vpop.eup %2525 }
 0x183   :  { %v1229_v18 = vpop.f32.mrb[84].mxu1  ;;  %2535 = vtanh.bf16 %v4000_v0  ;;  %v4009_v0 = vpack.c.bf16 %v4007_v42, %v4008_v26  ;;  %v4013_v26 = vld [vmem:[#allocation15_spill] sm:$0xff] }
 0x184   :  { %956 = vmatpush1.bf16.msra.mxu0 %v2518_v40  ;;  %v1231_v14 = vpop.f32.mrb[85].mxu1  ;;  %v3543_v33 = vadd.f32 %v1229_v18, %v2952_v53  ;;  %2537 = vtanh.bf16 %v4003_v36  ;;  %v4004_v18 = vld [vmem:[#allocation12_spill] sm:$0xff] }
 0x185   :  { %v1233_v49 = vpop.f32.mrb[86].mxu1  ;;  %957 = vmatprep.subr.bf16.mxu0 %v2520_v9  ;;  %v3549_v41 = vadd.f32 %v1231_v14, %v2954_v55  ;;  %v2528_v9 = vpop.eup %2527  ;;  %v4005_v14 = vld [vmem:[#allocation10_spill] sm:$0xff] }
 0x186   :  { %v3546_v60 = vadd.f32 %v1233_v49, %v2952_v53  ;;  %v1235_v50 = vpop.f32.mrb[87].mxu1  ;;  %v4006_v49 = vpack.c.bf16 %v4004_v18, %v4005_v14  ;;  %v2530_v27 = vpop.eup %2529  ;;  %v4011_v18 = vld [vmem:[#allocation14_spill] sm:$0xff] }
 0x187   :  { %v3555_v35 = vadd.f32 %v1235_v50, %v2954_v55 }
 0x188   :  { %958 = vmatpush1.bf16.msra.mxu0 %v2522_v21  ;;  %2539 = vtanh.bf16 %v4006_v49  ;;  %v2532_v21 = vpop.eup %2531 }
 0x189   :  { %v1349_v40 = vpack.c.bf16 %v3555_v35, %v3549_v41  ;;  %959 = vmatprep.subr.bf16.mxu0 %v2524_v19  ;;  %2541 = vtanh.bf16 %v4009_v0 }
 0x18b   :  { %v1239_v46 = vpop.f32.mrb[88].mxu1 }
 0x18c   :  { %960 = vmatpush1.bf16.msra.mxu0 %v2526_v6  ;;  %v1241_v57 = vpop.f32.mrb[89].mxu1  ;;  %v3571_v19 = vadd.f32 %v1239_v46, %v2952_v53  ;;  %v4010_v6 = vld [vmem:[#allocation16_spill] sm:$0xff]  ;;  %v2534_v46 = vpop.eup %2533 }
 0x18d   :  { %v1243_v50 = vpop.f32.mrb[90].mxu1  ;;  %961 = vmatprep.subr.bf16.mxu0 %v2528_v9  ;;  %v3577_v36 = vadd.f32 %v1241_v57, %v2954_v55  ;;  %v4012_v14 = vpack.c.bf16 %v4010_v6, %v4011_v18  ;;  %v4014_v57 = vld [vmem:[#allocation13_spill] sm:$0xff]  ;;  %v4016_v6 = vpack.c.bf16 %v3332_v48, %v3326_v45 }
 0x18e   :  { %v3574_v59 = vadd.f32 %v1243_v50, %v2952_v53  ;;  %v1245_v2 = vpop.f32.mrb[91].mxu1  ;;  %v2536_v42 = vpop.eup %2535  ;;  %v4015_v0 = vpack.c.bf16 %v4013_v26, %v4014_v57  ;;  %v4018_v50 = vpack.c.bf16 %v3329_v4, %v4017_v43 }
 0x18f   :  { %2543 = vtanh.bf16 %v4012_v14  ;;  %v3583_v9 = vadd.f32 %v1245_v2, %v2954_v55  ;;  %v2538_v14 = vpop.eup %2537 }
 0x190   :  { %962 = vmatpush1.bf16.msra.mxu0 %v2530_v27  ;;  %2545 = vtanh.bf16 %v4015_v0 }
 0x191   :  { %963 = vmatprep.subr.bf16.mxu0 %v2532_v21  ;;  %2547 = vtanh.bf16 %v4016_v6  ;;  %v4021_v10 = vpack.c.bf16 %v3583_v9, %v3577_v36 }
 0x192   :  { %2549 = vtanh.bf16 %v4018_v50  ;;  %v4019_v50 = vpack.c.bf16 %v3357_v58, %v3347_v7 }
 0x193   :  { %v1249_v2 = vpop.f32.mrb[92].mxu1  ;;  %v2540_v27 = vpop.eup %2539  ;;  %2551 = vtanh.bf16 %v434_v11 }
 0x194   :  { %964 = vmatpush1.bf16.msra.mxu0 %v2534_v46  ;;  %v1251_v18 = vpop.f32.mrb[93].mxu1  ;;  %v3599_v21 = vadd.f32 %v1249_v2, %v2952_v53  ;;  %v2542_v43 = vpop.eup %2541  ;;  %2553 = vtanh.bf16 %v4019_v50 }
 0x195   :  { %v1253_v49 = vpop.f32.mrb[94].mxu1  ;;  %965 = vmatprep.subr.bf16.mxu0 %v2536_v42  ;;  %v3605_v45 = vadd.f32 %v1251_v18, %v2954_v55  ;;  %2555 = vtanh.bf16 %v1339_v8 }
 0x196   :  { %v3602_v26 = vadd.f32 %v1253_v49, %v2952_v53  ;;  %v1255_v57 = vpop.f32.mrb[95].mxu1  ;;  %2557 = vtanh.bf16 %v1338_v3 }
 0x197   :  { %v3611_v48 = vadd.f32 %v1255_v57, %v2954_v55  ;;  %2559 = vtanh.bf16 %v1341_v20  ;;  %v2204_v57 = vcombine.high %v3654_v37, %v3654_v37 }
 0x198   :  { %v1352_v4 = vpack.c.bf16 %v3602_v26, %v3599_v21  ;;  %966 = vmatpush1.bf16.msra.mxu0 %v2538_v14  ;;  %2561 = vtanh.bf16 %v1340_v56 }
 0x199   :  { %v1353_v49 = vpack.c.bf16 %v3611_v48, %v3605_v45  ;;  %967 = vmatprep.subr.bf16.mxu0 %v2540_v27  ;;  %2563 = vtanh.bf16 %v1343_v13 }
 0x19a   :  { %v2544_v46 = vpop.eup %2543  ;;  %2565 = vtanh.bf16 %v1342_v47 }
 0x19b   :  { %v1259_v42 = vpop.f32.mrb[96].mxu1  ;;  %v2546_v16 = vpop.eup %2545  ;;  %2567 = vtanh.bf16 %v1345_v61 }
 0x19c   :  { %968 = vmatpush1.bf16.msra.mxu0 %v2542_v43  ;;  %v1261_v32 = vpop.f32.mrb[97].mxu1  ;;  %v2548_v0 = vpop.eup %2547  ;;  %v3624_v6 = vadd.f32 %v1259_v42, %v2952_v53  ;;  %2569 = vtanh.bf16 %v1344_v12 }
 0x19d   :  { %v1263_v11 = vpop.f32.mrb[98].mxu1  ;;  %969 = vmatprep.subr.bf16.mxu0 %v2544_v46  ;;  %v3630_v7 = vadd.f32 %v1261_v32, %v2954_v55  ;;  %v2550_v15 = vpop.eup %2549  ;;  %2571 = vtanh.bf16 %v1347_v24 }
 0x19e   :  { %v3627_v2 = vadd.f32 %v1263_v11, %v2952_v53  ;;  %v1265_v18 = vpop.f32.mrb[99].mxu1  ;;  %v2552_v14 = vpop.eup %2551  ;;  %2573 = vtanh.bf16 %v1346_v54 }
 0x19f   :  { %v3633_v58 = vadd.f32 %v1265_v18, %v2954_v55  ;;  %v2554_v23 = vpop.eup %2553  ;;  %2575 = vtanh.bf16 %v1349_v40 }
 0x1a0   :  { %v1354_v44 = vpack.c.bf16 %v3627_v2, %v3624_v6  ;;  %970 = vmatpush1.bf16.msra.mxu0 %v2546_v16  ;;  %v2556_v34 = vpop.eup %2555  ;;  %v4020_v16 = vpack.c.bf16 %v3546_v60, %v3543_v33  ;;  %v4022_v60 = vpack.c.bf16 %v3574_v59, %v3571_v19 }
 0x1a1   :  { %v1355_v8 = vpack.c.bf16 %v3633_v58, %v3630_v7  ;;  %971 = vmatprep.subr.bf16.mxu0 %v2548_v0  ;;  %v2558_v1 = vpop.eup %2557 }
 0x1a2   :  { %v2560_v22 = vpop.eup %2559  ;;  %2577 = vtanh.bf16 %v4020_v16 }
 0x1a3   :  { %v1269_v27 = vpop.f32.mrb[100].mxu1  ;;  %v2562_v50 = vpop.eup %2561  ;;  %2579 = vtanh.bf16 %v4021_v10 }
 0x1a4   :  { %972 = vmatpush1.bf16.msra.mxu0 %v2550_v15  ;;  %v1271_v63 = vpop.f32.mrb[101].mxu1  ;;  %v3657_v28 = vadd.f32 %v1269_v27, %v2952_v53  ;;  %v2564_v12 = vpop.eup %2563  ;;  %2581 = vtanh.bf16 %v4022_v60 }
 0x1a5   :  { %v1273_v3 = vpop.f32.mrb[102].mxu1  ;;  %973 = vmatprep.subr.bf16.mxu0 %v2552_v14  ;;  %v3663_v56 = vadd.f32 %v1271_v63, %v2954_v55  ;;  %v2566_v24 = vpop.eup %2565  ;;  %2583 = vtanh.bf16 %v1353_v49 }
 0x1a6   :  { %v3660_v31 = vadd.f32 %v1273_v3, %v2952_v53  ;;  %v1275_v52 = vpop.f32.mrb[103].mxu1  ;;  %v2568_v32 = vpop.eup %2567  ;;  %2585 = vtanh.bf16 %v1352_v4 }
 0x1a7   :  { %v3666_v20 = vadd.f32 %v1275_v52, %v2954_v55  ;;  %v2570_v40 = vpop.eup %2569  ;;  %2587 = vtanh.bf16 %v1355_v8 }
 0x1a8   :  { %v1356_v13 = vpack.c.bf16 %v3660_v31, %v3657_v28  ;;  %974 = vmatpush1.bf16.msra.mxu0 %v2554_v23  ;;  %v2572_v33 = vpop.eup %2571  ;;  %2589 = vtanh.bf16 %v1354_v44 }
 0x1a9   :  { %v1357_v43 = vpack.c.bf16 %v3666_v20, %v3663_v56  ;;  %1411 = vmatprep.subr.bf16.mxu0 %v2556_v34  ;;  %v2574_v9 = vpop.eup %2573 }
 0x1aa   :  { %v2576_v27 = vpop.eup %2575 }
 0x1ab   :  { %v1279_v46 = vpop.f32.mrb[104].mxu1  ;;  %976 = vmatmul.mubr.bf16.vlgmr.msra.gmra.mrb[64].mxu0 %v2135_v39  ;;  %2591 = vtanh.bf16 %v1357_v43 }
 0x1ac   :  { %v1281_v51 = vpop.f32.mrb[105].mxu1  ;;  %1412 = vmatpush1.bf16.msra.mxu0 %v2558_v1  ;;  %1443 = vmatprep.mubr.bf16.mxu0 %v2204_v57  ;;  %v3689_v30 = vadd.f32 %v1279_v46, %v2952_v53  ;;  %2593 = vtanh.bf16 %v1356_v13 }
 0x1ad   :  { %v1283_v47 = vpop.f32.mrb[106].mxu1  ;;  %1413 = vmatprep.subr.bf16.mxu0 %v2560_v22  ;;  %v1282_v25 = vadd.f32 %v1281_v51, %v2954_v55  ;;  %v2578_v49 = vpop.eup %2577 }
 0x1ae   :  { %v3692_v17 = vadd.f32 %v1283_v47, %v2952_v53  ;;  %v1285_v61 = vpop.f32.mrb[107].mxu1  ;;  %v2580_v21 = vpop.eup %2579 }
 0x1af   :  { %v1286_v38 = vadd.f32 %v1285_v61, %v2954_v55  ;;  %v2582_v7 = vpop.eup %2581 }
 0x1b0   :  { %v1358_v5 = vpack.c.bf16 %v3692_v17, %v3689_v30  ;;  %1414 = vmatpush1.bf16.msra.mxu0 %v2562_v50  ;;  %v2584_v8 = vpop.eup %2583 }
 0x1b1   :  { %v1359_v62 = vpack.c.bf16 %v1286_v38, %v1282_v25  ;;  %1415 = vmatprep.subr.bf16.mxu0 %v2564_v12  ;;  %v2586_v20 = vpop.eup %2585 }
 0x1b2   :  { %v2588_v57 = vpop.eup %2587 }
 0x1b3   :  { %v1289_v42 = vpop.f32.mrb[108].mxu1  ;;  %2595 = vtanh.bf16 %v1359_v62  ;;  %v2590_v13 = vpop.eup %2589 }
 0x1b4   :  { %v1291_v11 = vpop.f32.mrb[109].mxu1  ;;  %1416 = vmatpush1.bf16.msra.mxu0 %v2566_v24  ;;  %v1290_v54 = vadd.f32 %v1289_v42, %v2952_v53  ;;  %2597 = vtanh.bf16 %v1358_v5 }
 0x1b5   :  { %v1293_v29 = vpop.f32.mrb[110].mxu1  ;;  %1417 = vmatprep.subr.bf16.mxu0 %v2568_v32  ;;  %v1292_v0 = vadd.f32 %v1291_v11, %v2954_v55 }
 0x1b6   :  { %v1294_v41 = vadd.f32 %v1293_v29, %v2952_v53  ;;  %v1295_v35 = vpop.f32.mrb[111].mxu1  ;;  %v2592_v1 = vpop.eup %2591 }
 0x1b7   :  { %v1296_v18 = vadd.f32 %v1295_v35, %v2954_v55  ;;  %v2594_v17 = vpop.eup %2593 }
 0x1b8   :  { %v1360_v15 = vpack.c.bf16 %v1294_v41, %v1290_v54  ;;  %1418 = vmatpush1.bf16.msra.mxu0 %v2570_v40 }
 0x1b9   :  { %v1361_v36 = vpack.c.bf16 %v1296_v18, %v1292_v0  ;;  %1419 = vmatprep.subr.bf16.mxu0 %v2572_v33 }
 0x1bb   :  { %v1299_v14 = vpop.f32.mrb[112].mxu1  ;;  %2599 = vtanh.bf16 %v1361_v36 }
 0x1bc   :  { %v1301_v63 = vpop.f32.mrb[113].mxu1  ;;  %1420 = vmatpush1.bf16.msra.mxu0 %v2574_v9  ;;  %v1300_v59 = vadd.f32 %v1299_v14, %v2952_v53  ;;  %2601 = vtanh.bf16 %v1360_v15 }
 0x1bd   :  { %v1303_v19 = vpop.f32.mrb[114].mxu1  ;;  %1421 = vmatprep.subr.bf16.mxu0 %v2576_v27  ;;  %v1302_v23 = vadd.f32 %v1301_v63, %v2954_v55 }
 0x1be   :  { %v1304_v45 = vadd.f32 %v1303_v19, %v2952_v53  ;;  %v1305_v48 = vpop.f32.mrb[115].mxu1  ;;  %v2596_v25 = vpop.eup %2595 }
 0x1bf   :  { %v1306_v3 = vadd.f32 %v1305_v48, %v2954_v55  ;;  %v2598_v5 = vpop.eup %2597 }
 0x1c0   :  { %v1362_v26 = vpack.c.bf16 %v1304_v45, %v1300_v59  ;;  %1422 = vmatpush1.bf16.msra.mxu0 %v2578_v49 }
 0x1c1   :  { %v1363_v4 = vpack.c.bf16 %v1306_v3, %v1302_v23  ;;  %1423 = vmatprep.subr.bf16.mxu0 %v2580_v21 }
 0x1c3   :  { %v1309_v58 = vpop.f32.mrb[116].mxu1  ;;  %2603 = vtanh.bf16 %v1363_v4 }
 0x1c4   :  { %v1311_v52 = vpop.f32.mrb[117].mxu1  ;;  %1424 = vmatpush1.bf16.msra.mxu0 %v2582_v7  ;;  %v1310_v2 = vadd.f32 %v1309_v58, %v2952_v53  ;;  %2605 = vtanh.bf16 %v1362_v26 }
 0x1c5   :  { %v1313_v6 = vpop.f32.mrb[118].mxu1  ;;  %1425 = vmatprep.subr.bf16.mxu0 %v2584_v8  ;;  %v1312_v39 = vadd.f32 %v1311_v52, %v2954_v55 }
 0x1c6   :  { %v1314_v44 = vadd.f32 %v1313_v6, %v2952_v53  ;;  %v1315_v56 = vpop.f32.mrb[119].mxu1  ;;  %v2600_v24 = vpop.eup %2599 }
 0x1c7   :  { %v1316_v34 = vadd.f32 %v1315_v56, %v2954_v55  ;;  %v2602_v29 = vpop.eup %2601  ;;  %v3767_v56 = vld [vmem:[%s3934_s1 + $0x18] sm:$0xff] }
 0x1c8   :  { %v1364_v28 = vpack.c.bf16 %v1314_v44, %v1310_v2  ;;  %1426 = vmatpush1.bf16.msra.mxu0 %v2586_v20  ;;  %v2203_v44 = vcombine.low %v3654_v37, %v3654_v37 }
 0x1c9   :  { %v1365_v31 = vpack.c.bf16 %v1316_v34, %v1312_v39  ;;  %1427 = vmatprep.subr.bf16.mxu0 %v2588_v57  ;;  %v2272_v39 = vcombine.high %v3767_v56, %v3767_v56 }
 0x1cb   :  { %v1319_v43 = vpop.f32.mrb[120].mxu1  ;;  %2607 = vtanh.bf16 %v1365_v31 }
 0x1cc   :  { %v1321_v46 = vpop.f32.mrb[121].mxu1  ;;  %1428 = vmatpush1.bf16.msra.mxu0 %v2590_v13  ;;  %v1320_v51 = vadd.f32 %v1319_v43, %v2952_v53  ;;  %2609 = vtanh.bf16 %v1364_v28 }
 0x1cd   :  { %v1323_v22 = vpop.f32.mrb[122].mxu1  ;;  %1429 = vmatprep.subr.bf16.mxu0 %v2592_v1  ;;  %v1322_v61 = vadd.f32 %v1321_v46, %v2954_v55 }
 0x1ce   :  { %v1324_v47 = vadd.f32 %v1323_v22, %v2952_v53  ;;  %v1325_v30 = vpop.f32.mrb[123].mxu1  ;;  %v2604_v35 = vpop.eup %2603 }
 0x1cf   :  { %v1326_v50 = vadd.f32 %v1325_v30, %v2954_v55  ;;  %v2606_v18 = vpop.eup %2605 }
 0x1d0   :  { %v1366_v38 = vpack.c.bf16 %v1324_v47, %v1320_v51  ;;  %1430 = vmatpush1.bf16.msra.mxu0 %v2594_v17 }
 0x1d1   :  { %v1367_v12 = vpack.c.bf16 %v1326_v50, %v1322_v61  ;;  %1431 = vmatprep.subr.bf16.mxu0 %v2596_v25 }
 0x1d3   :  { %v1329_v62 = vpop.f32.mrb[124].mxu1  ;;  %2611 = vtanh.bf16 %v1367_v12 }
 0x1d4   :  { %v1331_v42 = vpop.f32.mrb[125].mxu1  ;;  %1432 = vmatpush1.bf16.msra.mxu0 %v2598_v5  ;;  %v1330_v16 = vadd.f32 %v1329_v62, %v2952_v53  ;;  %2613 = vtanh.bf16 %v1366_v38 }
 0x1d5   :  { %v1333_v32 = vpop.f32.mrb[126].mxu1  ;;  %1433 = vmatprep.subr.bf16.mxu0 %v2600_v24  ;;  %v1332_v54 = vadd.f32 %v1331_v42, %v2954_v55 }
 0x1d6   :  { %v1334_v11 = vadd.f32 %v1333_v32, %v2952_v53  ;;  %v1335_v10 = vpop.f32.mrb[127].mxu1  ;;  %v2608_v60 = vpop.eup %2607 }
 0x1d7   :  { %v1336_v41 = vadd.f32 %v1335_v10, %v2954_v55  ;;  %v2610_v63 = vpop.eup %2609 }
 0x1d8   :  { %v1368_v40 = vpack.c.bf16 %v1334_v11, %v1330_v16  ;;  %1434 = vmatpush1.bf16.msra.mxu0 %v2602_v29 }
 0x1d9   :  { %v1369_v0 = vpack.c.bf16 %v1336_v41, %v1332_v54  ;;  %1435 = vmatprep.subr.bf16.mxu0 %v2604_v35 }
 0x1db   :  { %2615 = vtanh.bf16 %v1369_v0  ;;  %v1649_v33 = vpop.f32.mrb[128].mxu1 }
 0x1dc   :  { %2617 = vtanh.bf16 %v1368_v40  ;;  %1436 = vmatpush1.bf16.msra.mxu0 %v2606_v18  ;;  %v1651_v15 = vpop.f32.mrb[129].mxu1  ;;  %v1650_v9 = vadd.f32 %v1649_v33, %v2952_v53 }
 0x1dd   :  { %1437 = vmatprep.subr.bf16.mxu0 %v2608_v60  ;;  %v1653_v36 = vpop.f32.mrb[130].mxu1  ;;  %v1652_v19 = vadd.f32 %v1651_v15, %v2954_v55 }
 0x1de   :  { %v1654_v14 = vadd.f32 %v1653_v36, %v2952_v53  ;;  %v1655_v27 = vpop.f32.mrb[131].mxu1  ;;  %v2612_v45 = vpop.eup %2611 }
 0x1df   :  { %v1656_v59 = vadd.f32 %v1655_v27, %v2954_v55  ;;  %v2614_v23 = vpop.eup %2613 }
 0x1e0   :  { %v1808_v48 = vpack.c.bf16 %v1654_v14, %v1650_v9  ;;  %1438 = vmatpush1.bf16.msra.mxu0 %v2610_v63 }
 0x1e1   :  { %v1809_v49 = vpack.c.bf16 %v1656_v59, %v1652_v19  ;;  %1439 = vmatprep.subr.bf16.mxu0 %v2612_v45 }
 0x1e3   :  { %2619 = vtanh.bf16 %v1809_v49  ;;  %v1659_v3 = vpop.f32.mrb[132].mxu1 }
 0x1e4   :  { %2621 = vtanh.bf16 %v1808_v48  ;;  %1440 = vmatpush1.bf16.msra.mxu0 %v2614_v23  ;;  %v1661_v21 = vpop.f32.mrb[133].mxu1  ;;  %v1660_v7 = vadd.f32 %v1659_v3, %v2952_v53 }
 0x1e5   :  { %v1663_v26 = vpop.f32.mrb[134].mxu1  ;;  %v1662_v6 = vadd.f32 %v1661_v21, %v2954_v55 }
 0x1e6   :  { %v2616_v4 = vpop.eup %2615  ;;  %v1664_v58 = vadd.f32 %v1663_v26, %v2952_v53  ;;  %v1665_v8 = vpop.f32.mrb[135].mxu1 }
 0x1e7   :  { %v2618_v52 = vpop.eup %2617  ;;  %v1666_v2 = vadd.f32 %v1665_v8, %v2954_v55  ;;  %1441 = vmatprep.subr.bf16.mxu0 %v2616_v4 }
 0x1e8   :  { %v1810_v20 = vpack.c.bf16 %v1664_v58, %v1660_v7  ;;  %1442 = vmatpush1.bf16.msra.mxu0 %v2618_v52 }
 0x1e9   :  { %v1811_v34 = vpack.c.bf16 %v1666_v2, %v1662_v6 }
 0x1eb   :  { %2623 = vtanh.bf16 %v1811_v34  ;;  %v1669_v57 = vpop.f32.mrb[136].mxu1  ;;  %1444 = vmatmul.mubr.bf16.vlgmr.msra.gmra.mrb[64].mxu0 %v2203_v44 }
 0x1ec   :  { %2625 = vtanh.bf16 %v1810_v20  ;;  %v1671_v28 = vpop.f32.mrb[137].mxu1  ;;  %1913 = vmatprep.mubr.bf16.mxu0 %v2272_v39  ;;  %v1670_v37 = vadd.f32 %v1669_v57, %v2952_v53 }
 0x1ed   :  { %v1673_v31 = vpop.f32.mrb[138].mxu1  ;;  %v1672_v22 = vadd.f32 %v1671_v28, %v2954_v55 }
 0x1ee   :  { %v2620_v13 = vpop.eup %2619  ;;  %v1674_v43 = vadd.f32 %v1673_v31, %v2952_v53  ;;  %v1675_v1 = vpop.f32.mrb[139].mxu1 }
 0x1ef   :  { %v2622_v46 = vpop.eup %2621  ;;  %v1676_v51 = vadd.f32 %v1675_v1, %v2954_v55  ;;  %1881 = vmatprep.subr.bf16.mxu0 %v2620_v13 }
 0x1f0   :  { %v1812_v47 = vpack.c.bf16 %v1674_v43, %v1670_v37  ;;  %1882 = vmatpush1.bf16.msra.mxu0 %v2622_v46 }
 0x1f1   :  { %v1813_v30 = vpack.c.bf16 %v1676_v51, %v1672_v22 }
 0x1f3   :  { %2627 = vtanh.bf16 %v1813_v30  ;;  %v1679_v17 = vpop.f32.mrb[140].mxu1 }
 0x1f4   :  { %2629 = vtanh.bf16 %v1812_v47  ;;  %v1681_v61 = vpop.f32.mrb[141].mxu1  ;;  %v1680_v38 = vadd.f32 %v1679_v17, %v2952_v53 }
 0x1f5   :  { %v1683_v50 = vpop.f32.mrb[142].mxu1  ;;  %v1682_v24 = vadd.f32 %v1681_v61, %v2954_v55 }
 0x1f6   :  { %v2624_v25 = vpop.eup %2623  ;;  %v1684_v12 = vadd.f32 %v1683_v50, %v2952_v53  ;;  %v1685_v5 = vpop.f32.mrb[143].mxu1 }
 0x1f7   :  { %v2626_v62 = vpop.eup %2625  ;;  %v1686_v42 = vadd.f32 %v1685_v5, %v2954_v55  ;;  %1883 = vmatprep.subr.bf16.mxu0 %v2624_v25 }
 0x1f8   :  { %v1814_v32 = vpack.c.bf16 %v1684_v12, %v1680_v38  ;;  %1884 = vmatpush1.bf16.msra.mxu0 %v2626_v62 }
 0x1f9   :  { %v1815_v16 = vpack.c.bf16 %v1686_v42, %v1682_v24 }
 0x1fb   :  { %2631 = vtanh.bf16 %v1815_v16  ;;  %v1689_v11 = vpop.f32.mrb[144].mxu1 }
 0x1fc   :  { %2633 = vtanh.bf16 %v1814_v32  ;;  %v1691_v10 = vpop.f32.mrb[145].mxu1  ;;  %v1690_v41 = vadd.f32 %v1689_v11, %v2952_v53 }
 0x1fd   :  { %v1693_v29 = vpop.f32.mrb[146].mxu1  ;;  %v1692_v18 = vadd.f32 %v1691_v10, %v2954_v55 }
 0x1fe   :  { %v2628_v54 = vpop.eup %2627  ;;  %v1694_v35 = vadd.f32 %v1693_v29, %v2952_v53  ;;  %v1695_v40 = vpop.f32.mrb[147].mxu1 }
 0x1ff   :  { %v2630_v0 = vpop.eup %2629  ;;  %v1696_v33 = vadd.f32 %v1695_v40, %v2954_v55  ;;  %1885 = vmatprep.subr.bf16.mxu0 %v2628_v54 }
 0x200   :  { %v1816_v60 = vpack.c.bf16 %v1694_v35, %v1690_v41  ;;  %1886 = vmatpush1.bf16.msra.mxu0 %v2630_v0 }
 0x201   :  { %v1817_v15 = vpack.c.bf16 %v1696_v33, %v1692_v18 }
 0x203   :  { %2635 = vtanh.bf16 %v1817_v15  ;;  %v1699_v36 = vpop.f32.mrb[148].mxu1 }
 0x204   :  { %2637 = vtanh.bf16 %v1816_v60  ;;  %v1701_v9 = vpop.f32.mrb[149].mxu1  ;;  %v1700_v63 = vadd.f32 %v1699_v36, %v2952_v53 }
 0x205   :  { %v1703_v14 = vpop.f32.mrb[150].mxu1  ;;  %v1702_v48 = vadd.f32 %v1701_v9, %v2954_v55 }
 0x206   :  { %v2632_v27 = vpop.eup %2631  ;;  %v1704_v19 = vadd.f32 %v1703_v14, %v2952_v53  ;;  %v1705_v59 = vpop.f32.mrb[151].mxu1 }
 0x207   :  { %v2634_v45 = vpop.eup %2633  ;;  %v1706_v49 = vadd.f32 %v1705_v59, %v2954_v55  ;;  %1887 = vmatprep.subr.bf16.mxu0 %v2632_v27 }
 0x208   :  { %v1818_v23 = vpack.c.bf16 %v1704_v19, %v1700_v63  ;;  %1888 = vmatpush1.bf16.msra.mxu0 %v2634_v45 }
 0x209   :  { %v1819_v3 = vpack.c.bf16 %v1706_v49, %v1702_v48 }
 0x20b   :  { %2639 = vtanh.bf16 %v1819_v3  ;;  %v1709_v21 = vpop.f32.mrb[152].mxu1 }
 0x20c   :  { %2641 = vtanh.bf16 %v1818_v23  ;;  %v1711_v26 = vpop.f32.mrb[153].mxu1  ;;  %v1710_v58 = vadd.f32 %v1709_v21, %v2952_v53 }
 0x20d   :  { %v1713_v4 = vpop.f32.mrb[154].mxu1  ;;  %v1712_v2 = vadd.f32 %v1711_v26, %v2954_v55 }
 0x20e   :  { %v2636_v7 = vpop.eup %2635  ;;  %v1714_v8 = vadd.f32 %v1713_v4, %v2952_v53  ;;  %v1715_v52 = vpop.f32.mrb[155].mxu1 }
 0x20f   :  { %v2638_v6 = vpop.eup %2637  ;;  %v1716_v44 = vadd.f32 %v1715_v52, %v2954_v55  ;;  %1889 = vmatprep.subr.bf16.mxu0 %v2636_v7 }
 0x210   :  { %v1820_v20 = vpack.c.bf16 %v1714_v8, %v1710_v58  ;;  %1890 = vmatpush1.bf16.msra.mxu0 %v2638_v6 }
 0x211   :  { %v1821_v39 = vpack.c.bf16 %v1716_v44, %v1712_v2 }
 0x213   :  { %2643 = vtanh.bf16 %v1821_v39  ;;  %v1719_v34 = vpop.f32.mrb[156].mxu1 }
 0x214   :  { %2645 = vtanh.bf16 %v1820_v20  ;;  %v1721_v57 = vpop.f32.mrb[157].mxu1  ;;  %v1720_v13 = vadd.f32 %v1719_v34, %v2952_v53 }
 0x215   :  { %v1723_v28 = vpop.f32.mrb[158].mxu1  ;;  %v1722_v46 = vadd.f32 %v1721_v57, %v2954_v55 }
 0x216   :  { %v2640_v31 = vpop.eup %2639  ;;  %v1724_v37 = vadd.f32 %v1723_v28, %v2952_v53  ;;  %v1725_v43 = vpop.f32.mrb[159].mxu1 }
 0x217   :  { %v2642_v1 = vpop.eup %2641  ;;  %v1726_v22 = vadd.f32 %v1725_v43, %v2954_v55  ;;  %1891 = vmatprep.subr.bf16.mxu0 %v2640_v31 }
 0x218   :  { %v1822_v51 = vpack.c.bf16 %v1724_v37, %v1720_v13  ;;  %1892 = vmatpush1.bf16.msra.mxu0 %v2642_v1 }
 0x219   :  { %v1823_v47 = vpack.c.bf16 %v1726_v22, %v1722_v46 }
 0x21b   :  { %2647 = vtanh.bf16 %v1823_v47  ;;  %v1729_v30 = vpop.f32.mrb[160].mxu1 }
 0x21c   :  { %2649 = vtanh.bf16 %v1822_v51  ;;  %v1731_v17 = vpop.f32.mrb[161].mxu1  ;;  %v1730_v25 = vadd.f32 %v1729_v30, %v2952_v53 }
 0x21d   :  { %v1733_v61 = vpop.f32.mrb[162].mxu1  ;;  %v1732_v62 = vadd.f32 %v1731_v17, %v2954_v55 }
 0x21e   :  { %v2644_v50 = vpop.eup %2643  ;;  %v1734_v38 = vadd.f32 %v1733_v61, %v2952_v53  ;;  %v1735_v12 = vpop.f32.mrb[163].mxu1 }
 0x21f   :  { %v2646_v5 = vpop.eup %2645  ;;  %v1736_v24 = vadd.f32 %v1735_v12, %v2954_v55  ;;  %1893 = vmatprep.subr.bf16.mxu0 %v2644_v50 }
 0x220   :  { %v1824_v42 = vpack.c.bf16 %v1734_v38, %v1730_v25  ;;  %1894 = vmatpush1.bf16.msra.mxu0 %v2646_v5 }
 0x221   :  { %v1825_v32 = vpack.c.bf16 %v1736_v24, %v1732_v62 }
 0x223   :  { %2651 = vtanh.bf16 %v1825_v32  ;;  %v1739_v16 = vpop.f32.mrb[164].mxu1 }
 0x224   :  { %2653 = vtanh.bf16 %v1824_v42  ;;  %v1741_v11 = vpop.f32.mrb[165].mxu1  ;;  %v1740_v54 = vadd.f32 %v1739_v16, %v2952_v53 }
 0x225   :  { %v1743_v10 = vpop.f32.mrb[166].mxu1  ;;  %v1742_v0 = vadd.f32 %v1741_v11, %v2954_v55 }
 0x226   :  { %v2648_v29 = vpop.eup %2647  ;;  %v1744_v41 = vadd.f32 %v1743_v10, %v2952_v53  ;;  %v1745_v35 = vpop.f32.mrb[167].mxu1 }
 0x227   :  { %v2650_v40 = vpop.eup %2649  ;;  %v1746_v18 = vadd.f32 %v1745_v35, %v2954_v55  ;;  %1895 = vmatprep.subr.bf16.mxu0 %v2648_v29 }
 0x228   :  { %v1826_v33 = vpack.c.bf16 %v1744_v41, %v1740_v54  ;;  %1896 = vmatpush1.bf16.msra.mxu0 %v2650_v40 }
 0x229   :  { %v1827_v60 = vpack.c.bf16 %v1746_v18, %v1742_v0 }
 0x22b   :  { %2655 = vtanh.bf16 %v1827_v60  ;;  %v1749_v15 = vpop.f32.mrb[168].mxu1 }
 0x22c   :  { %2657 = vtanh.bf16 %v1826_v33  ;;  %v1751_v36 = vpop.f32.mrb[169].mxu1  ;;  %v1750_v27 = vadd.f32 %v1749_v15, %v2952_v53 }
 0x22d   :  { %v1753_v9 = vpop.f32.mrb[170].mxu1  ;;  %v1752_v45 = vadd.f32 %v1751_v36, %v2954_v55 }
 0x22e   :  { %v2652_v14 = vpop.eup %2651  ;;  %v1754_v63 = vadd.f32 %v1753_v9, %v2952_v53  ;;  %v1755_v19 = vpop.f32.mrb[171].mxu1 }
 0x22f   :  { %v2654_v59 = vpop.eup %2653  ;;  %v1756_v48 = vadd.f32 %v1755_v19, %v2954_v55  ;;  %1897 = vmatprep.subr.bf16.mxu0 %v2652_v14 }
 0x230   :  { %v1828_v49 = vpack.c.bf16 %v1754_v63, %v1750_v27  ;;  %1898 = vmatpush1.bf16.msra.mxu0 %v2654_v59 }
 0x231   :  { %v1829_v23 = vpack.c.bf16 %v1756_v48, %v1752_v45 }
 0x233   :  { %2659 = vtanh.bf16 %v1829_v23  ;;  %v1759_v3 = vpop.f32.mrb[172].mxu1 }
 0x234   :  { %2661 = vtanh.bf16 %v1828_v49  ;;  %v1761_v21 = vpop.f32.mrb[173].mxu1  ;;  %v1760_v7 = vadd.f32 %v1759_v3, %v2952_v53 }
 0x235   :  { %v1763_v26 = vpop.f32.mrb[174].mxu1  ;;  %v1762_v6 = vadd.f32 %v1761_v21, %v2954_v55  ;;  %v1941_v21 = vld [vmem:[%s3935_s4 + $0x88] sm:$0xff] }
 0x236   :  { %v2656_v4 = vpop.eup %2655  ;;  %v1764_v58 = vadd.f32 %v1763_v26, %v2952_v53  ;;  %v1765_v8 = vpop.f32.mrb[175].mxu1 }
 0x237   :  { %v2658_v52 = vpop.eup %2657  ;;  %v1766_v2 = vadd.f32 %v1765_v8, %v2954_v55  ;;  %1899 = vmatprep.subr.bf16.mxu0 %v2656_v4  ;;  %v1925_v4 = vld [vmem:[%s3935_s4 + $0x8] sm:$0xff]  ;;  %v1943_v8 = vld [vmem:[%s3935_s4 + $0x98] sm:$0xff] }
 0x238   :  { %v1830_v44 = vpack.c.bf16 %v1764_v58, %v1760_v7  ;;  %1900 = vmatpush1.bf16.msra.mxu0 %v2658_v52  ;;  %v1942_v58 = vld [vmem:[%s3935_s4 + $0x90] sm:$0xff] }
 0x239   :  { %v1831_v20 = vpack.c.bf16 %v1766_v2, %v1762_v6  ;;  %v2271_v6 = vcombine.low %v3767_v56, %v3767_v56  ;;  %v1945_v56 = vld [vmem:[%s3935_s4 + $0xa8] sm:$0xff] }
 0x23b   :  { %2663 = vtanh.bf16 %v1831_v20  ;;  %v1769_v39 = vpop.f32.mrb[176].mxu1  ;;  %v1926_v20 = vld [vmem:[%s3935_s4 + $0x10] sm:$0xff] }
 0x23c   :  { %2665 = vtanh.bf16 %v1830_v44  ;;  %v1771_v34 = vpop.f32.mrb[177].mxu1  ;;  %v1770_v31 = vadd.f32 %v1769_v39, %v2952_v53  ;;  %v2312_v44 = vpack.c.bf16 %v1943_v8, %v1942_v58  ;;  %v1927_v39 = vld [vmem:[%s3935_s4 + $0x18] sm:$0xff] }
 0x23d   :  { %v1773_v57 = vpop.f32.mrb[178].mxu1  ;;  %v1772_v1 = vadd.f32 %v1771_v34, %v2954_v55  ;;  %v1944_v34 = vld [vmem:[%s3935_s4 + $0xa0] sm:$0xff] }
 0x23e   :  { %v2660_v28 = vpop.eup %2659  ;;  %v1774_v13 = vadd.f32 %v1773_v57, %v2952_v53  ;;  %v1775_v37 = vpop.f32.mrb[179].mxu1  ;;  %v2314_v57 = vpack.c.bf16 %v1927_v39, %v1926_v20 }
 0x23f   :  { %v2662_v43 = vpop.eup %2661  ;;  %v1776_v46 = vadd.f32 %v1775_v37, %v2954_v55  ;;  %1901 = vmatprep.subr.bf16.mxu0 %v2660_v28  ;;  %v2316_v28 = vpack.c.bf16 %v1945_v56, %v1944_v34  ;;  %v1946_v37 = vld [vmem:[%s3935_s4 + $0xb0] sm:$0xff] }
 0x240   :  { %v1832_v22 = vpack.c.bf16 %v1774_v13, %v1770_v31  ;;  %1902 = vmatpush1.bf16.msra.mxu0 %v2662_v43  ;;  %v1928_v31 = vld [vmem:[%s3935_s4 + $0x20] sm:$0xff]  ;;  %v1929_v13 = vld [vmem:[%s3935_s4 + $0x28] sm:$0xff]  ;;  %v1947_v43 = vld [vmem:[%s3935_s4 + $0xb8] sm:$0xff] }
 0x241   :  { %v1833_v51 = vpack.c.bf16 %v1776_v46, %v1772_v1  ;;  %v2318_v1 = vpack.c.bf16 %v1929_v13, %v1928_v31  ;;  %v2320_v46 = vpack.c.bf16 %v1947_v43, %v1946_v37 }
 0x243   :  { %2667 = vtanh.bf16 %v1833_v51  ;;  %v1779_v47 = vpop.f32.mrb[180].mxu1  ;;  %v1931_v51 = vld [vmem:[%s3935_s4 + $0x38] sm:$0xff] }
 0x244   :  { %2669 = vtanh.bf16 %v1832_v22  ;;  %v1781_v30 = vpop.f32.mrb[181].mxu1  ;;  %v1780_v50 = vadd.f32 %v1779_v47, %v2952_v53  ;;  %v1930_v22 = vld [vmem:[%s3935_s4 + $0x30] sm:$0xff]  ;;  %v1948_v47 = vld [vmem:[%s3935_s4 + $0xc0] sm:$0xff] }
 0x245   :  { %v1783_v17 = vpop.f32.mrb[182].mxu1  ;;  %v1782_v5 = vadd.f32 %v1781_v30, %v2954_v55  ;;  %v1949_v30 = vld [vmem:[%s3935_s4 + $0xc8] sm:$0xff] }
 0x246   :  { %v2664_v61 = vpop.eup %2663  ;;  %v1784_v25 = vadd.f32 %v1783_v17, %v2952_v53  ;;  %v1785_v38 = vpop.f32.mrb[183].mxu1  ;;  %v2322_v17 = vpack.c.bf16 %v1931_v51, %v1930_v22 }
 0x247   :  { %v2666_v12 = vpop.eup %2665  ;;  %v1786_v62 = vadd.f32 %v1785_v38, %v2954_v55  ;;  %1903 = vmatprep.subr.bf16.mxu0 %v2664_v61  ;;  %v2324_v61 = vpack.c.bf16 %v1949_v30, %v1948_v47  ;;  %v1950_v38 = vld [vmem:[%s3935_s4 + $0xd0] sm:$0xff] }
 0x248   :  { %v1834_v24 = vpack.c.bf16 %v1784_v25, %v1780_v50  ;;  %1904 = vmatpush1.bf16.msra.mxu0 %v2666_v12  ;;  %v1932_v50 = vld [vmem:[%s3935_s4 + $0x40] sm:$0xff]  ;;  %v1933_v25 = vld [vmem:[%s3935_s4 + $0x48] sm:$0xff]  ;;  %v1951_v12 = vld [vmem:[%s3935_s4 + $0xd8] sm:$0xff] }
 0x249   :  { %v1835_v42 = vpack.c.bf16 %v1786_v62, %v1782_v5  ;;  %v2326_v5 = vpack.c.bf16 %v1933_v25, %v1932_v50  ;;  %v2328_v62 = vpack.c.bf16 %v1951_v12, %v1950_v38 }
 0x24b   :  { %2671 = vtanh.bf16 %v1835_v42  ;;  %v1789_v32 = vpop.f32.mrb[184].mxu1  ;;  %v1935_v42 = vld [vmem:[%s3935_s4 + $0x58] sm:$0xff] }
 0x24c   :  { %2673 = vtanh.bf16 %v1834_v24  ;;  %v1791_v16 = vpop.f32.mrb[185].mxu1  ;;  %v1790_v29 = vadd.f32 %v1789_v32, %v2952_v53  ;;  %v1934_v24 = vld [vmem:[%s3935_s4 + $0x50] sm:$0xff]  ;;  %v1952_v32 = vld [vmem:[%s3935_s4 + $0xe0] sm:$0xff] }
 0x24d   :  { %v1793_v11 = vpop.f32.mrb[186].mxu1  ;;  %v1792_v40 = vadd.f32 %v1791_v16, %v2954_v55  ;;  %v1953_v16 = vld [vmem:[%s3935_s4 + $0xe8] sm:$0xff] }
 0x24e   :  { %v2668_v10 = vpop.eup %2667  ;;  %v1794_v54 = vadd.f32 %v1793_v11, %v2952_v53  ;;  %v1795_v41 = vpop.f32.mrb[187].mxu1  ;;  %v2330_v11 = vpack.c.bf16 %v1935_v42, %v1934_v24 }
 0x24f   :  { %v2670_v35 = vpop.eup %2669  ;;  %v1796_v0 = vadd.f32 %v1795_v41, %v2954_v55  ;;  %1905 = vmatprep.subr.bf16.mxu0 %v2668_v10  ;;  %v2332_v10 = vpack.c.bf16 %v1953_v16, %v1952_v32  ;;  %v1954_v41 = vld [vmem:[%s3935_s4 + $0xf0] sm:$0xff] }
 0x250   :  { %v1836_v18 = vpack.c.bf16 %v1794_v54, %v1790_v29  ;;  %1906 = vmatpush1.bf16.msra.mxu0 %v2670_v35  ;;  %v1936_v29 = vld [vmem:[%s3935_s4 + $0x60] sm:$0xff]  ;;  %v1937_v54 = vld [vmem:[%s3935_s4 + $0x68] sm:$0xff]  ;;  %v1955_v35 = vld [vmem:[%s3935_s4 + $0xf8] sm:$0xff] }
 0x251   :  { %v1837_v33 = vpack.c.bf16 %v1796_v0, %v1792_v40  ;;  %v2334_v40 = vpack.c.bf16 %v1937_v54, %v1936_v29  ;;  %v2336_v0 = vpack.c.bf16 %v1955_v35, %v1954_v41 }
 0x253   :  { %2675 = vtanh.bf16 %v1837_v33  ;;  %v1799_v60 = vpop.f32.mrb[188].mxu1  ;;  %v1939_v33 = vld [vmem:[%s3935_s4 + $0x78] sm:$0xff] }
 0x254   :  { %2677 = vtanh.bf16 %v1836_v18  ;;  %v1801_v15 = vpop.f32.mrb[189].mxu1  ;;  %v1800_v14 = vadd.f32 %v1799_v60, %v2952_v53  ;;  %v1938_v18 = vld [vmem:[%s3935_s4 + $0x70] sm:$0xff] }
 0x255   :  { %v1803_v36 = vpop.f32.mrb[190].mxu1  ;;  %v1802_v59 = vadd.f32 %v1801_v15, %v2954_v55  ;;  %v2338_v60 = vpack.c.bf16 %v1939_v33, %v1938_v18 }
 0x256   :  { %v2672_v9 = vpop.eup %2671  ;;  %v1804_v27 = vadd.f32 %v1803_v36, %v2952_v53  ;;  %v1805_v63 = vpop.f32.mrb[191].mxu1  ;;  %v1940_v53 = vld [vmem:[%s3935_s4 + $0x80] sm:$0xff] }
 0x257   :  { %v2674_v19 = vpop.eup %2673  ;;  %v1806_v45 = vadd.f32 %v1805_v63, %v2954_v55  ;;  %1907 = vmatprep.subr.bf16.mxu0 %v2672_v9  ;;  %v2308_v26 = vpack.c.bf16 %v1941_v21, %v1940_v53  ;;  %v1924_v55 = vld [vmem:[%s3935_s4] sm:$0xff] }
 0x258   :  { %v1838_v48 = vpack.c.bf16 %v1804_v27, %v1800_v14  ;;  %1908 = vmatpush1.bf16.msra.mxu0 %v2674_v19  ;;  %v2310_v2 = vpack.c.bf16 %v1925_v4, %v1924_v55  ;;  %v1956_v63 = vld [vmem:[%s3936_s5] sm:$0xff] }
 0x259   :  { %v1839_v49 = vpack.c.bf16 %v1806_v45, %v1802_v59 }
 0x25b   :  { %2679 = vtanh.bf16 %v1839_v49 }
 0x25c   :  { %2681 = vtanh.bf16 %v1838_v48 }
 0x25e   :  { %v2676_v23 = vpop.eup %2675 }
 0x25f   :  { %v2678_v3 = vpop.eup %2677  ;;  %1909 = vmatprep.subr.bf16.mxu0 %v2676_v23 }
 0x260   :  { %1910 = vmatpush1.bf16.msra.mxu0 %v2678_v3 }
 0x266   :  { %v2680_v7 = vpop.eup %2679 }
 0x267   :  { %v2682_v52 = vpop.eup %2681  ;;  %1911 = vmatprep.subr.bf16.mxu0 %v2680_v7 }
 0x268   :  { %1912 = vmatpush1.bf16.msra.mxu0 %v2682_v52 }
 0x269   :  { %2309 = vmatprep.subr.bf16.mxu0 %v2308_v26 }
 0x26b   :  { %1914 = vmatmul.mubr.bf16.vlgmr.msra.gmra.mrb[64].mxu0 %v2271_v6 }
 0x26c   :  { %2311 = vmatpush3.bf16.msra.mxu0 %v2310_v2 }
 0x26d   :  { %2313 = vmatprep.subr.bf16.mxu0 %v2312_v44 }
 0x270   :  { %2315 = vmatpush3.bf16.msra.mxu0 %v2314_v57 }
 0x271   :  { %2317 = vmatprep.subr.bf16.mxu0 %v2316_v28 }
 0x274   :  { %2319 = vmatpush3.bf16.msra.mxu0 %v2318_v1 }
 0x275   :  { %2321 = vmatprep.subr.bf16.mxu0 %v2320_v46 }
 0x278   :  { %2323 = vmatpush3.bf16.msra.mxu0 %v2322_v17 }
 0x279   :  { %2325 = vmatprep.subr.bf16.mxu0 %v2324_v61 }
 0x27c   :  { %2327 = vmatpush3.bf16.msra.mxu0 %v2326_v5 }
 0x27d   :  { %2329 = vmatprep.subr.bf16.mxu0 %v2328_v62 }
 0x280   :  { %2331 = vmatpush3.bf16.msra.mxu0 %v2330_v11 }
 0x281   :  { %2333 = vmatprep.subr.bf16.mxu0 %v2332_v10 }
 0x284   :  { %2335 = vmatpush3.bf16.msra.mxu0 %v2334_v40 }
 0x285   :  { %2337 = vmatprep.subr.bf16.mxu0 %v2336_v0 }
 0x288   :  { %2339 = vmatpush3.bf16.msra.mxu0 %v2338_v60 }
 0x33e   :  { %v1915_v15 = vpop.f32.mrb[64].mxu0 }
 0x33f   :  { %v1917_v36 = vpop.f32.mrb[65].mxu0 }
 0x340   :  { %v1919_v9 = vpop.f32.mrb[66].mxu0  ;;  %2021 = vmatprep.mubr.f32.mxu0 %v1917_v36 }
 0x341   :  { %v1920_v14 = vpop.f32.mrb[67].mxu0  ;;  %2022 = vmatmul.mubr.f32.vlgmr.msra.gmra.mrb[68].mxu0 %v1915_v15 }
 0x414   :  { %v2305_v27 = vpop.f32.mrb[68].mxu0 }
 0x415   :  { %v2306_v19 = vpop.f32.mrb[69].mxu0 }
 0x416   :  { %v2307_v59 = vadd.f32 %v2306_v19, %v2305_v27 }
 0x418   :  { %v2024_v45 = vadd.f32 %v2307_v59, %v1956_v63 }
 0x41a   :  { %2027 = vst [vmem:[%s3937_s6] sm:$0xff] %v2024_v45 }

</bundles_post_ra>
